<compile_context>
chip_gen: v5e
topology: v5e:2x2
jax: 0.10.0
libtpu: 0.0.40
codegen_flags: <defaults>
</compile_context>

<pallas_src>
import functools

import jax
import jax.numpy as jnp
from jax.experimental import pallas as pl
from jax.experimental.pallas import tpu as pltpu


# ----------------------------------------------------------------------------
# Fused kernel: weight generation + unfold/weighted-sum aggregation
# ----------------------------------------------------------------------------
def _involution_fused_kernel(xp_ref, w1_ref, s_ref, bb_ref, w2e_ref, b2e_ref,
                             o_ref, *, K, TH, W, C, pad):
    # xp_ref : (H+2p, W+2p, C)  zero-padded NHWC image for this batch element
    # w1_ref : (C, Cr)          conv1 1x1 weight
    # s_ref  : (1, Cr)          fused-BN scale
    # bb_ref : (1, Cr)          fused-BN bias
    # w2e_ref: (K2, Cr, C)      conv2 weight per kernel offset, repeated to C channels
    # b2e_ref: (K2, 1, C)       conv2 bias   per kernel offset, repeated to C channels
    # o_ref  : (TH, W, C)       output row tile
    t = pl.program_id(1)
    row0 = pl.multiple_of(t * TH, TH)          # top output row of this tile

    # ---- per-pixel hidden layer: conv1(1x1) + BN + ReLU (stays in VMEM) -----
    xc = xp_ref[pl.ds(row0 + pad, TH), pl.ds(pad, W), :]          # (TH, W, C)
    h = jnp.dot(xc.reshape(TH * W, C).astype(jnp.float32), w1_ref[...],
                preferred_element_type=jnp.float32)
    h = jnp.maximum(h * s_ref[...] + bb_ref[...], 0.0)            # (TH*W, Cr)

    # ---- involution: conv2 (per offset) fused with the weighted K^2 sum -----
    acc = jnp.zeros((TH * W, C), jnp.float32)
    for ky in range(K):
        slab = xp_ref[pl.ds(row0 + ky, TH), :, :]                 # (TH, W+2p, C)
        for kx in range(K):
            k = ky * K + kx
            # per-offset weight for ALL channels (group weight already repeated)
            wk = jnp.dot(h, w2e_ref[k], preferred_element_type=jnp.float32)
            wk = wk + b2e_ref[k]                                  # (TH*W, C)
            patch = slab[:, kx:kx + W, :].astype(jnp.float32)     # (TH, W, C)
            acc = acc + wk * patch.reshape(TH * W, C)
    o_ref[...] = acc.reshape(TH, W, C).astype(o_ref.dtype)


# ----------------------------------------------------------------------------
# Wrapper
# ----------------------------------------------------------------------------
def _pick_row_tile(H, W, C, itemsize=4, target_bytes=2 << 20):
    # Largest divisor of H whose output row-tile stays under ~2 MiB.
    per_row = max(1, W * C * itemsize)
    best = 1
    for th in range(1, H + 1):
        if H % th == 0 and th * per_row <= target_bytes:
            best = th
    return best


def involution_forward(x_nchw, params, kernel_size, stride, group_channels=16,
                       row_tile=None):
    assert stride == 1, "only stride=1 implemented"
    B, C, H, W = x_nchw.shape
    assert C % group_channels == 0 and C % 4 == 0
    groups = C // group_channels
    K = kernel_size
    K2 = K * K
    p = (K - 1) // 2
    Cr = C // 4
    eps = 1e-5

    w1 = params["w1"]                            # (C, Cr)
    w2 = params["w2"]                            # (Cr, groups*K2), col = g*K2 + k
    b2 = params["b2"]                            # (groups*K2,)

    # Fold BN into an affine scale/bias on the conv1 output.
    bn_scale = (params["bn_gamma"] / jnp.sqrt(params["bn_var"] + eps))
    bn_bias = params["bn_beta"] - params["bn_mean"] * bn_scale
    bn_scale = bn_scale.reshape(1, Cr).astype(jnp.float32)
    bn_bias = bn_bias.reshape(1, Cr).astype(jnp.float32)

    # Pre-expand conv2 weights/bias: (Cr, groups*K2) -> (K2, Cr, C) so that
    # in-kernel per-offset weights are already broadcast over group_channels.
    w2e = jnp.transpose(w2.reshape(Cr, groups, K2), (2, 0, 1))      # (K2, Cr, groups)
    w2e = jnp.repeat(w2e, group_channels, axis=2).astype(jnp.float32)   # (K2, Cr, C)
    b2e = jnp.transpose(b2.reshape(groups, K2), (1, 0))             # (K2, groups)
    b2e = jnp.repeat(b2e, group_channels, axis=1).reshape(K2, 1, C).astype(jnp.float32)

    # NCHW -> NHWC with the halo pad fused into the same relayout pass.
    xp = jnp.pad(jnp.transpose(x_nchw, (0, 2, 3, 1)),
                 ((0, 0), (p, p), (p, p), (0, 0)))

    TH = row_tile if row_tile is not None else _pick_row_tile(H, W, C)
    assert H % TH == 0, "row_tile must divide H"

    out_nhwc = pl.pallas_call(
        functools.partial(_involution_fused_kernel,
                          K=K, TH=TH, W=W, C=C, pad=p),
        out_shape=jax.ShapeDtypeStruct((B, H, W, C), x_nchw.dtype),
        grid=(B, H // TH),
        in_specs=[
            # padded image: resident across the row-tile axis (index depends on b only)
            pl.BlockSpec((None, H + 2 * p, W + 2 * p, C), lambda b, t: (b, 0, 0, 0)),
            pl.BlockSpec((C, Cr), lambda b, t: (0, 0)),
            pl.BlockSpec((1, Cr), lambda b, t: (0, 0)),
            pl.BlockSpec((1, Cr), lambda b, t: (0, 0)),
            pl.BlockSpec((K2, Cr, C), lambda b, t: (0, 0, 0)),
            pl.BlockSpec((K2, 1, C), lambda b, t: (0, 0, 0)),
        ],
        out_specs=pl.BlockSpec((None, TH, W, C), lambda b, t: (b, t, 0, 0)),
        compiler_params=pltpu.CompilerParams(
            dimension_semantics=("parallel", "parallel")),
    )(xp, w1.astype(jnp.float32), bn_scale, bn_bias, w2e, b2e)

    return jnp.transpose(out_nhwc, (0, 3, 1, 2))     # back to NCHW


# ----------------------------------------------------------------------------
# Pure-JAX reference (mirrors the PyTorch forward) for a sanity check.
# ----------------------------------------------------------------------------
def involution_reference(x_nchw, params, kernel_size, stride, group_channels=16):
    assert stride == 1
    B, C, H, W = x_nchw.shape
    groups = C // group_channels
    K = kernel_size
    K2 = K * K
    p = (K - 1) // 2
    eps = 1e-5

    h = jnp.einsum("bchw,cd->bdhw", x_nchw, params["w1"])
    scale = params["bn_gamma"] / jnp.sqrt(params["bn_var"] + eps)
    bias = params["bn_beta"] - params["bn_mean"] * scale
    h = h * scale[None, :, None, None] + bias[None, :, None, None]
    h = jnp.maximum(h, 0.0)
    wgt = jnp.einsum("bchw,cd->bdhw", h, params["w2"]) + params["b2"][None, :, None, None]
    wgt = wgt.reshape(B, groups, K2, H, W)

    xp = jnp.pad(x_nchw, ((0, 0), (0, 0), (p, p), (p, p)))
    acc = jnp.zeros_like(x_nchw)
    for dy in range(K):
        for dx in range(K):
            k = dy * K + dx
            patch = xp[:, :, dy:dy + H, dx:dx + W]                  # (B,C,H,W)
            wk = jnp.repeat(wgt[:, :, k], group_channels, axis=1)   # (B,C,H,W)
            acc = acc + wk * patch
    return acc


if __name__ == "__main__":
    # Module config: channels must be a multiple of group_channels(16) and 4.
    B, C, H, W = 2, 32, 16, 16
    kernel_size, stride = 3, 1
    group_channels = 16
    groups = C // group_channels
    Cr = C // 4
    K2 = kernel_size * kernel_size

    key = jax.random.PRNGKey(0)
    k_x, k_w1, k_w2, k_b2, k_g, k_b, k_m, k_v = jax.random.split(key, 8)

    x = jax.random.normal(k_x, (B, C, H, W), jnp.float32)

    params = {
        # conv1: 1x1 conv (no bias, followed by BN)
        "w1": jax.random.normal(k_w1, (C, Cr), jnp.float32) * 0.1,
        "bn_gamma": 1.0 + 0.1 * jax.random.normal(k_g, (Cr,), jnp.float32),
        "bn_beta": 0.1 * jax.random.normal(k_b, (Cr,), jnp.float32),
        "bn_mean": 0.1 * jax.random.normal(k_m, (Cr,), jnp.float32),
        "bn_var": jax.random.uniform(k_v, (Cr,), jnp.float32, 0.5, 1.5),
        # conv2: 1x1 conv with bias, no norm/act
        "w2": jax.random.normal(k_w2, (Cr, groups * K2), jnp.float32) * 0.1,
        "b2": 0.1 * jax.random.normal(k_b2, (groups * K2,), jnp.float32),
    }

    # row_tile=8 -> grid (B, 2): exercises the multi-row-tile path.
    out = involution_forward(x, params, kernel_size, stride, group_channels,
                             row_tile=8)
    out = jax.block_until_ready(out)

    ref = involution_reference(x, params, kernel_size, stride, group_channels)
    assert out.shape == (B, C, H, W)
    assert jnp.allclose(out, ref, atol=1e-4, rtol=1e-4), "mismatch vs reference"

    print("KERNEL_OK")
</pallas_src>

<mosaic_0001>
module attributes {stable_mosaic.version = 11 : i64} {
  func.func @_involution_fused_kernel(%arg0: i32, %arg1: i32, %arg2: memref<1x18x18x32xf32, #tpu.memory_space<vmem>>, %arg3: memref<32x8xf32, #tpu.memory_space<vmem>>, %arg4: memref<1x8xf32, #tpu.memory_space<vmem>>, %arg5: memref<1x8xf32, #tpu.memory_space<vmem>>, %arg6: memref<9x8x32xf32, #tpu.memory_space<vmem>>, %arg7: memref<9x1x32xf32, #tpu.memory_space<vmem>>, %arg8: memref<1x8x16x32xf32, #tpu.memory_space<vmem>>) attributes {dimension_semantics = [#tpu.dimension_semantics<parallel>, #tpu.dimension_semantics<parallel>], iteration_bounds = array<i64: 2, 2>, scalar_prefetch = 0 : i64, scratch_operands = 0 : i64, tpu.core_type = #tpu.core_type<tc>, window_params = [{transform_indices = @transform_0, window_bounds = array<i64: 1, 18, 18, 32>}, {pipeline_mode = #tpu.pipeline_mode<synchronous>, transform_indices = @transform_1, window_bounds = array<i64: 32, 8>}, {pipeline_mode = #tpu.pipeline_mode<synchronous>, transform_indices = @transform_2, window_bounds = array<i64: 1, 8>}, {pipeline_mode = #tpu.pipeline_mode<synchronous>, transform_indices = @transform_3, window_bounds = array<i64: 1, 8>}, {pipeline_mode = #tpu.pipeline_mode<synchronous>, transform_indices = @transform_4, window_bounds = array<i64: 9, 8, 32>}, {pipeline_mode = #tpu.pipeline_mode<synchronous>, transform_indices = @transform_5, window_bounds = array<i64: 9, 1, 32>}, {transform_indices = @transform_6, window_bounds = array<i64: 1, 8, 16, 32>}]} {
    %c8_i32 = arith.constant 8 : i32
    %0 = arith.muli %arg1, %c8_i32 : i32
    %1 = tpu.assume_multiple %0, 8 : i32
    %c1_i32 = arith.constant 1 : i32
    %2 = arith.addi %1, %c1_i32 : i32
    %c0 = arith.constant 0 : index
    %3 = arith.index_cast %2 : i32 to index
    %c1 = arith.constant 1 : index
    %c0_0 = arith.constant 0 : index
    %4 = vector.load %arg2[%c0, %3, %c1, %c0_0] : memref<1x18x18x32xf32, #tpu.memory_space<vmem>>, vector<1x8x16x32xf32>
    %5 = vector.shape_cast %4 : vector<1x8x16x32xf32> to vector<8x16x32xf32>
    %6 = vector.shape_cast %5 : vector<8x16x32xf32> to vector<128x32xf32>
    %c0_1 = arith.constant 0 : index
    %c0_2 = arith.constant 0 : index
    %7 = vector.load %arg3[%c0_1, %c0_2] : memref<32x8xf32, #tpu.memory_space<vmem>>, vector<32x8xf32>
    %cst = arith.constant dense<0.000000e+00> : vector<128x8xf32>
    %8 = tpu.matmul %6, %7, %cst {dimension_numbers = #tpu.dot_dimension_numbers<[1], [0], [0], [1], [0, 0, 1, 1], [], []>} : vector<128x32xf32>, vector<32x8xf32>, vector<128x8xf32> -> vector<128x8xf32>
    %c0_3 = arith.constant 0 : index
    %c0_4 = arith.constant 0 : index
    %9 = vector.load %arg4[%c0_3, %c0_4] : memref<1x8xf32, #tpu.memory_space<vmem>>, vector<1x8xf32>
    %10 = vector.broadcast %9 : vector<1x8xf32> to vector<128x8xf32>
    %11 = arith.mulf %8, %10 : vector<128x8xf32>
    %c0_5 = arith.constant 0 : index
    %c0_6 = arith.constant 0 : index
    %12 = vector.load %arg5[%c0_5, %c0_6] : memref<1x8xf32, #tpu.memory_space<vmem>>, vector<1x8xf32>
    %13 = vector.broadcast %12 : vector<1x8xf32> to vector<128x8xf32>
    %14 = arith.addf %11, %13 : vector<128x8xf32>
    %cst_7 = arith.constant 0.000000e+00 : f32
    %15 = vector.broadcast %cst_7 : f32 to vector<128x8xf32>
    %16 = arith.maximumf %14, %15 : vector<128x8xf32>
    %cst_8 = arith.constant 0.000000e+00 : f32
    %17 = vector.broadcast %cst_8 : f32 to vector<128x32xf32>
    %c0_i32 = arith.constant 0 : i32
    %18 = arith.addi %1, %c0_i32 : i32
    %c0_9 = arith.constant 0 : index
    %19 = arith.index_cast %18 : i32 to index
    %c0_10 = arith.constant 0 : index
    %c0_11 = arith.constant 0 : index
    %20 = vector.load %arg2[%c0_9, %19, %c0_10, %c0_11] : memref<1x18x18x32xf32, #tpu.memory_space<vmem>>, vector<1x8x18x32xf32>
    %21 = vector.shape_cast %20 : vector<1x8x18x32xf32> to vector<8x18x32xf32>
    %c0_12 = arith.constant 0 : index
    %c0_13 = arith.constant 0 : index
    %c0_14 = arith.constant 0 : index
    %22 = vector.load %arg6[%c0_12, %c0_13, %c0_14] : memref<9x8x32xf32, #tpu.memory_space<vmem>>, vector<1x8x32xf32>
    %23 = vector.shape_cast %22 : vector<1x8x32xf32> to vector<8x32xf32>
    %cst_15 = arith.constant dense<0.000000e+00> : vector<128x32xf32>
    %24 = tpu.matmul %16, %23, %cst_15 {dimension_numbers = #tpu.dot_dimension_numbers<[1], [0], [0], [1], [0, 0, 1, 1], [], []>} : vector<128x8xf32>, vector<8x32xf32>, vector<128x32xf32> -> vector<128x32xf32>
    %c0_16 = arith.constant 0 : index
    %c0_17 = arith.constant 0 : index
    %c0_18 = arith.constant 0 : index
    %25 = vector.load %arg7[%c0_16, %c0_17, %c0_18] : memref<9x1x32xf32, #tpu.memory_space<vmem>>, vector<1x1x32xf32>
    %26 = vector.shape_cast %25 : vector<1x1x32xf32> to vector<1x32xf32>
    %27 = vector.broadcast %26 : vector<1x32xf32> to vector<128x32xf32>
    %28 = arith.addf %24, %27 : vector<128x32xf32>
    %29 = vector.extract_strided_slice %21 {offsets = [0, 0, 0], sizes = [8, 16, 32], strides = [1, 1, 1]} : vector<8x18x32xf32> to vector<8x16x32xf32>
    %30 = vector.shape_cast %29 : vector<8x16x32xf32> to vector<128x32xf32>
    %31 = arith.mulf %28, %30 : vector<128x32xf32>
    %32 = arith.addf %17, %31 : vector<128x32xf32>
    %c1_19 = arith.constant 1 : index
    %c0_20 = arith.constant 0 : index
    %c0_21 = arith.constant 0 : index
    %33 = vector.load %arg6[%c1_19, %c0_20, %c0_21] : memref<9x8x32xf32, #tpu.memory_space<vmem>>, vector<1x8x32xf32>
    %34 = vector.shape_cast %33 : vector<1x8x32xf32> to vector<8x32xf32>
    %cst_22 = arith.constant dense<0.000000e+00> : vector<128x32xf32>
    %35 = tpu.matmul %16, %34, %cst_22 {dimension_numbers = #tpu.dot_dimension_numbers<[1], [0], [0], [1], [0, 0, 1, 1], [], []>} : vector<128x8xf32>, vector<8x32xf32>, vector<128x32xf32> -> vector<128x32xf32>
    %c1_23 = arith.constant 1 : index
    %c0_24 = arith.constant 0 : index
    %c0_25 = arith.constant 0 : index
    %36 = vector.load %arg7[%c1_23, %c0_24, %c0_25] : memref<9x1x32xf32, #tpu.memory_space<vmem>>, vector<1x1x32xf32>
    %37 = vector.shape_cast %36 : vector<1x1x32xf32> to vector<1x32xf32>
    %38 = vector.broadcast %37 : vector<1x32xf32> to vector<128x32xf32>
    %39 = arith.addf %35, %38 : vector<128x32xf32>
    %40 = vector.extract_strided_slice %21 {offsets = [0, 1, 0], sizes = [8, 16, 32], strides = [1, 1, 1]} : vector<8x18x32xf32> to vector<8x16x32xf32>
    %41 = vector.shape_cast %40 : vector<8x16x32xf32> to vector<128x32xf32>
    %42 = arith.mulf %39, %41 : vector<128x32xf32>
    %43 = arith.addf %32, %42 : vector<128x32xf32>
    %c2 = arith.constant 2 : index
    %c0_26 = arith.constant 0 : index
    %c0_27 = arith.constant 0 : index
    %44 = vector.load %arg6[%c2, %c0_26, %c0_27] : memref<9x8x32xf32, #tpu.memory_space<vmem>>, vector<1x8x32xf32>
    %45 = vector.shape_cast %44 : vector<1x8x32xf32> to vector<8x32xf32>
    %cst_28 = arith.constant dense<0.000000e+00> : vector<128x32xf32>
    %46 = tpu.matmul %16, %45, %cst_28 {dimension_numbers = #tpu.dot_dimension_numbers<[1], [0], [0], [1], [0, 0, 1, 1], [], []>} : vector<128x8xf32>, vector<8x32xf32>, vector<128x32xf32> -> vector<128x32xf32>
    %c2_29 = arith.constant 2 : index
    %c0_30 = arith.constant 0 : index
    %c0_31 = arith.constant 0 : index
    %47 = vector.load %arg7[%c2_29, %c0_30, %c0_31] : memref<9x1x32xf32, #tpu.memory_space<vmem>>, vector<1x1x32xf32>
    %48 = vector.shape_cast %47 : vector<1x1x32xf32> to vector<1x32xf32>
    %49 = vector.broadcast %48 : vector<1x32xf32> to vector<128x32xf32>
    %50 = arith.addf %46, %49 : vector<128x32xf32>
    %51 = vector.extract_strided_slice %21 {offsets = [0, 2, 0], sizes = [8, 16, 32], strides = [1, 1, 1]} : vector<8x18x32xf32> to vector<8x16x32xf32>
    %52 = vector.shape_cast %51 : vector<8x16x32xf32> to vector<128x32xf32>
    %53 = arith.mulf %50, %52 : vector<128x32xf32>
    %54 = arith.addf %43, %53 : vector<128x32xf32>
    %c1_i32_32 = arith.constant 1 : i32
    %55 = arith.addi %1, %c1_i32_32 : i32
    %c0_33 = arith.constant 0 : index
    %56 = arith.index_cast %55 : i32 to index
    %c0_34 = arith.constant 0 : index
    %c0_35 = arith.constant 0 : index
    %57 = vector.load %arg2[%c0_33, %56, %c0_34, %c0_35] : memref<1x18x18x32xf32, #tpu.memory_space<vmem>>, vector<1x8x18x32xf32>
    %58 = vector.shape_cast %57 : vector<1x8x18x32xf32> to vector<8x18x32xf32>
    %c3 = arith.constant 3 : index
    %c0_36 = arith.constant 0 : index
    %c0_37 = arith.constant 0 : index
    %59 = vector.load %arg6[%c3, %c0_36, %c0_37] : memref<9x8x32xf32, #tpu.memory_space<vmem>>, vector<1x8x32xf32>
    %60 = vector.shape_cast %59 : vector<1x8x32xf32> to vector<8x32xf32>
    %cst_38 = arith.constant dense<0.000000e+00> : vector<128x32xf32>
    %61 = tpu.matmul %16, %60, %cst_38 {dimension_numbers = #tpu.dot_dimension_numbers<[1], [0], [0], [1], [0, 0, 1, 1], [], []>} : vector<128x8xf32>, vector<8x32xf32>, vector<128x32xf32> -> vector<128x32xf32>
    %c3_39 = arith.constant 3 : index
    %c0_40 = arith.constant 0 : index
    %c0_41 = arith.constant 0 : index
    %62 = vector.load %arg7[%c3_39, %c0_40, %c0_41] : memref<9x1x32xf32, #tpu.memory_space<vmem>>, vector<1x1x32xf32>
    %63 = vector.shape_cast %62 : vector<1x1x32xf32> to vector<1x32xf32>
    %64 = vector.broadcast %63 : vector<1x32xf32> to vector<128x32xf32>
    %65 = arith.addf %61, %64 : vector<128x32xf32>
    %66 = vector.extract_strided_slice %58 {offsets = [0, 0, 0], sizes = [8, 16, 32], strides = [1, 1, 1]} : vector<8x18x32xf32> to vector<8x16x32xf32>
    %67 = vector.shape_cast %66 : vector<8x16x32xf32> to vector<128x32xf32>
    %68 = arith.mulf %65, %67 : vector<128x32xf32>
    %69 = arith.addf %54, %68 : vector<128x32xf32>
    %c4 = arith.constant 4 : index
    %c0_42 = arith.constant 0 : index
    %c0_43 = arith.constant 0 : index
    %70 = vector.load %arg6[%c4, %c0_42, %c0_43] : memref<9x8x32xf32, #tpu.memory_space<vmem>>, vector<1x8x32xf32>
    %71 = vector.shape_cast %70 : vector<1x8x32xf32> to vector<8x32xf32>
    %cst_44 = arith.constant dense<0.000000e+00> : vector<128x32xf32>
    %72 = tpu.matmul %16, %71, %cst_44 {dimension_numbers = #tpu.dot_dimension_numbers<[1], [0], [0], [1], [0, 0, 1, 1], [], []>} : vector<128x8xf32>, vector<8x32xf32>, vector<128x32xf32> -> vector<128x32xf32>
    %c4_45 = arith.constant 4 : index
    %c0_46 = arith.constant 0 : index
    %c0_47 = arith.constant 0 : index
    %73 = vector.load %arg7[%c4_45, %c0_46, %c0_47] : memref<9x1x32xf32, #tpu.memory_space<vmem>>, vector<1x1x32xf32>
    %74 = vector.shape_cast %73 : vector<1x1x32xf32> to vector<1x32xf32>
    %75 = vector.broadcast %74 : vector<1x32xf32> to vector<128x32xf32>
    %76 = arith.addf %72, %75 : vector<128x32xf32>
    %77 = vector.extract_strided_slice %58 {offsets = [0, 1, 0], sizes = [8, 16, 32], strides = [1, 1, 1]} : vector<8x18x32xf32> to vector<8x16x32xf32>
    %78 = vector.shape_cast %77 : vector<8x16x32xf32> to vector<128x32xf32>
    %79 = arith.mulf %76, %78 : vector<128x32xf32>
    %80 = arith.addf %69, %79 : vector<128x32xf32>
    %c5 = arith.constant 5 : index
    %c0_48 = arith.constant 0 : index
    %c0_49 = arith.constant 0 : index
    %81 = vector.load %arg6[%c5, %c0_48, %c0_49] : memref<9x8x32xf32, #tpu.memory_space<vmem>>, vector<1x8x32xf32>
    %82 = vector.shape_cast %81 : vector<1x8x32xf32> to vector<8x32xf32>
    %cst_50 = arith.constant dense<0.000000e+00> : vector<128x32xf32>
    %83 = tpu.matmul %16, %82, %cst_50 {dimension_numbers = #tpu.dot_dimension_numbers<[1], [0], [0], [1], [0, 0, 1, 1], [], []>} : vector<128x8xf32>, vector<8x32xf32>, vector<128x32xf32> -> vector<128x32xf32>
    %c5_51 = arith.constant 5 : index
    %c0_52 = arith.constant 0 : index
    %c0_53 = arith.constant 0 : index
    %84 = vector.load %arg7[%c5_51, %c0_52, %c0_53] : memref<9x1x32xf32, #tpu.memory_space<vmem>>, vector<1x1x32xf32>
    %85 = vector.shape_cast %84 : vector<1x1x32xf32> to vector<1x32xf32>
    %86 = vector.broadcast %85 : vector<1x32xf32> to vector<128x32xf32>
    %87 = arith.addf %83, %86 : vector<128x32xf32>
    %88 = vector.extract_strided_slice %58 {offsets = [0, 2, 0], sizes = [8, 16, 32], strides = [1, 1, 1]} : vector<8x18x32xf32> to vector<8x16x32xf32>
    %89 = vector.shape_cast %88 : vector<8x16x32xf32> to vector<128x32xf32>
    %90 = arith.mulf %87, %89 : vector<128x32xf32>
    %91 = arith.addf %80, %90 : vector<128x32xf32>
    %c2_i32 = arith.constant 2 : i32
    %92 = arith.addi %1, %c2_i32 : i32
    %c0_54 = arith.constant 0 : index
    %93 = arith.index_cast %92 : i32 to index
    %c0_55 = arith.constant 0 : index
    %c0_56 = arith.constant 0 : index
    %94 = vector.load %arg2[%c0_54, %93, %c0_55, %c0_56] : memref<1x18x18x32xf32, #tpu.memory_space<vmem>>, vector<1x8x18x32xf32>
    %95 = vector.shape_cast %94 : vector<1x8x18x32xf32> to vector<8x18x32xf32>
    %c6 = arith.constant 6 : index
    %c0_57 = arith.constant 0 : index
    %c0_58 = arith.constant 0 : index
    %96 = vector.load %arg6[%c6, %c0_57, %c0_58] : memref<9x8x32xf32, #tpu.memory_space<vmem>>, vector<1x8x32xf32>
    %97 = vector.shape_cast %96 : vector<1x8x32xf32> to vector<8x32xf32>
    %cst_59 = arith.constant dense<0.000000e+00> : vector<128x32xf32>
    %98 = tpu.matmul %16, %97, %cst_59 {dimension_numbers = #tpu.dot_dimension_numbers<[1], [0], [0], [1], [0, 0, 1, 1], [], []>} : vector<128x8xf32>, vector<8x32xf32>, vector<128x32xf32> -> vector<128x32xf32>
    %c6_60 = arith.constant 6 : index
    %c0_61 = arith.constant 0 : index
    %c0_62 = arith.constant 0 : index
    %99 = vector.load %arg7[%c6_60, %c0_61, %c0_62] : memref<9x1x32xf32, #tpu.memory_space<vmem>>, vector<1x1x32xf32>
    %100 = vector.shape_cast %99 : vector<1x1x32xf32> to vector<1x32xf32>
    %101 = vector.broadcast %100 : vector<1x32xf32> to vector<128x32xf32>
    %102 = arith.addf %98, %101 : vector<128x32xf32>
    %103 = vector.extract_strided_slice %95 {offsets = [0, 0, 0], sizes = [8, 16, 32], strides = [1, 1, 1]} : vector<8x18x32xf32> to vector<8x16x32xf32>
    %104 = vector.shape_cast %103 : vector<8x16x32xf32> to vector<128x32xf32>
    %105 = arith.mulf %102, %104 : vector<128x32xf32>
    %106 = arith.addf %91, %105 : vector<128x32xf32>
    %c7 = arith.constant 7 : index
    %c0_63 = arith.constant 0 : index
    %c0_64 = arith.constant 0 : index
    %107 = vector.load %arg6[%c7, %c0_63, %c0_64] : memref<9x8x32xf32, #tpu.memory_space<vmem>>, vector<1x8x32xf32>
    %108 = vector.shape_cast %107 : vector<1x8x32xf32> to vector<8x32xf32>
    %cst_65 = arith.constant dense<0.000000e+00> : vector<128x32xf32>
    %109 = tpu.matmul %16, %108, %cst_65 {dimension_numbers = #tpu.dot_dimension_numbers<[1], [0], [0], [1], [0, 0, 1, 1], [], []>} : vector<128x8xf32>, vector<8x32xf32>, vector<128x32xf32> -> vector<128x32xf32>
    %c7_66 = arith.constant 7 : index
    %c0_67 = arith.constant 0 : index
    %c0_68 = arith.constant 0 : index
    %110 = vector.load %arg7[%c7_66, %c0_67, %c0_68] : memref<9x1x32xf32, #tpu.memory_space<vmem>>, vector<1x1x32xf32>
    %111 = vector.shape_cast %110 : vector<1x1x32xf32> to vector<1x32xf32>
    %112 = vector.broadcast %111 : vector<1x32xf32> to vector<128x32xf32>
    %113 = arith.addf %109, %112 : vector<128x32xf32>
    %114 = vector.extract_strided_slice %95 {offsets = [0, 1, 0], sizes = [8, 16, 32], strides = [1, 1, 1]} : vector<8x18x32xf32> to vector<8x16x32xf32>
    %115 = vector.shape_cast %114 : vector<8x16x32xf32> to vector<128x32xf32>
    %116 = arith.mulf %113, %115 : vector<128x32xf32>
    %117 = arith.addf %106, %116 : vector<128x32xf32>
    %c8 = arith.constant 8 : index
    %c0_69 = arith.constant 0 : index
    %c0_70 = arith.constant 0 : index
    %118 = vector.load %arg6[%c8, %c0_69, %c0_70] : memref<9x8x32xf32, #tpu.memory_space<vmem>>, vector<1x8x32xf32>
    %119 = vector.shape_cast %118 : vector<1x8x32xf32> to vector<8x32xf32>
    %cst_71 = arith.constant dense<0.000000e+00> : vector<128x32xf32>
    %120 = tpu.matmul %16, %119, %cst_71 {dimension_numbers = #tpu.dot_dimension_numbers<[1], [0], [0], [1], [0, 0, 1, 1], [], []>} : vector<128x8xf32>, vector<8x32xf32>, vector<128x32xf32> -> vector<128x32xf32>
    %c8_72 = arith.constant 8 : index
    %c0_73 = arith.constant 0 : index
    %c0_74 = arith.constant 0 : index
    %121 = vector.load %arg7[%c8_72, %c0_73, %c0_74] : memref<9x1x32xf32, #tpu.memory_space<vmem>>, vector<1x1x32xf32>
    %122 = vector.shape_cast %121 : vector<1x1x32xf32> to vector<1x32xf32>
    %123 = vector.broadcast %122 : vector<1x32xf32> to vector<128x32xf32>
    %124 = arith.addf %120, %123 : vector<128x32xf32>
    %125 = vector.extract_strided_slice %95 {offsets = [0, 2, 0], sizes = [8, 16, 32], strides = [1, 1, 1]} : vector<8x18x32xf32> to vector<8x16x32xf32>
    %126 = vector.shape_cast %125 : vector<8x16x32xf32> to vector<128x32xf32>
    %127 = arith.mulf %124, %126 : vector<128x32xf32>
    %128 = arith.addf %117, %127 : vector<128x32xf32>
    %129 = vector.shape_cast %128 : vector<128x32xf32> to vector<8x16x32xf32>
    %c0_75 = arith.constant 0 : index
    %c0_76 = arith.constant 0 : index
    %c0_77 = arith.constant 0 : index
    %c0_78 = arith.constant 0 : index
    %130 = vector.load %arg8[%c0_75, %c0_76, %c0_77, %c0_78] : memref<1x8x16x32xf32, #tpu.memory_space<vmem>>, vector<1x8x16x32xf32>
    %131 = vector.shape_cast %130 : vector<1x8x16x32xf32> to vector<8x16x32xf32>
    %132 = vector.shape_cast %129 : vector<8x16x32xf32> to vector<1x8x16x32xf32>
    tpu.vector_store %arg8[%c0_75, %c0_76, %c0_77, %c0_78], %132 {strides = array<i32>} : memref<1x8x16x32xf32, #tpu.memory_space<vmem>>, vector<1x8x16x32xf32>,
    return
  }
  func.func @transform_0(%arg0: i32, %arg1: i32) -> (i32, i32, i32, i32) {
    %c0_i32 = arith.constant 0 : i32
    %c0_i32_0 = arith.constant 0 : i32
    %c0_i32_1 = arith.constant 0 : i32
    %c0_i32_2 = arith.constant 0 : i32
    return %arg0, %c0_i32, %c0_i32_0, %c0_i32_1 : i32, i32, i32, i32
  }
  func.func @transform_1(%arg0: i32, %arg1: i32) -> (i32, i32) {
    %c0_i32 = arith.constant 0 : i32
    %c0_i32_0 = arith.constant 0 : i32
    %c0_i32_1 = arith.constant 0 : i32
    return %c0_i32, %c0_i32_0 : i32, i32
  }
  func.func @transform_2(%arg0: i32, %arg1: i32) -> (i32, i32) {
    %c0_i32 = arith.constant 0 : i32
    %c0_i32_0 = arith.constant 0 : i32
    %c0_i32_1 = arith.constant 0 : i32
    return %c0_i32, %c0_i32_0 : i32, i32
  }
  func.func @transform_3(%arg0: i32, %arg1: i32) -> (i32, i32) {
    %c0_i32 = arith.constant 0 : i32
    %c0_i32_0 = arith.constant 0 : i32
    %c0_i32_1 = arith.constant 0 : i32
    return %c0_i32, %c0_i32_0 : i32, i32
  }
  func.func @transform_4(%arg0: i32, %arg1: i32) -> (i32, i32, i32) {
    %c0_i32 = arith.constant 0 : i32
    %c0_i32_0 = arith.constant 0 : i32
    %c0_i32_1 = arith.constant 0 : i32
    %c0_i32_2 = arith.constant 0 : i32
    return %c0_i32, %c0_i32_0, %c0_i32_1 : i32, i32, i32
  }
  func.func @transform_5(%arg0: i32, %arg1: i32) -> (i32, i32, i32) {
    %c0_i32 = arith.constant 0 : i32
    %c0_i32_0 = arith.constant 0 : i32
    %c0_i32_1 = arith.constant 0 : i32
    %c0_i32_2 = arith.constant 0 : i32
    return %c0_i32, %c0_i32_0, %c0_i32_1 : i32, i32, i32
  }
  func.func @transform_6(%arg0: i32, %arg1: i32) -> (i32, i32, i32, i32) {
    %c0_i32 = arith.constant 0 : i32
    %c0_i32_0 = arith.constant 0 : i32
    %c0_i32_1 = arith.constant 0 : i32
    return %arg0, %arg1, %c0_i32, %c0_i32_0 : i32, i32, i32, i32
  }
}

</mosaic_0001>

<bundles_post_ra>
// kernel: tpu_custom_call.1
= control target key start
LH: loop header
LB: loop body
LE: loop exit
PB: predicated region body
PF: predicated region fallthrough
CT: control target
= control target key end

     0   :  { %11 = vsyncpa [#allocation3], 0  ;;  %s3927_s0 = inlined_call_operand.vmem [shape: f32[2,18,18,32], index: 0, kind: input, shape index: {}]   ;;  %s3928_s1 = inlined_call_operand.vmem [shape: f32[32,8], index: 1, kind: input, shape index: {}]   ;;  %s3929_s2 = inlined_call_operand.vmem [shape: f32[1,8], index: 2, kind: input, shape index: {}]   ;;  %s3930_s3 = inlined_call_operand.vmem [shape: f32[1,8], index: 3, kind: input, shape index: {}]   ;;  %s3931_s4 = inlined_call_operand.vmem [shape: f32[9,8,32], index: 4, kind: input, shape index: {}]   ;;  %s3932_s5 = inlined_call_operand.vmem [shape: f32[9,1,32], index: 5, kind: input, shape index: {}]   ;;  %s3933_s6 = inlined_call_operand.hbm [shape: f32[2,16,16,32], index: 6, kind: output, shape index: {}]  }
   0x1   :  { %13 = vsyncpa [#allocation3 + $0x1], 0  ;;  %s2538_s21 = smov 0   ;;  %s2540_s22 = smov 0  }
   0x2   :  { %s2542_s23 = smov 0   ;;  %s2544_s24 = smov 0  }
   0x3   :  { %s2546_s25 = smov 0   ;;  %s2548_s26 = smov 0  }
   0x4   :  { %s2550_s27 = smov 0   ;;  %s2552_s28 = smov 0  }
   0x5 LB: > { %s2050_s29 = sadd.s32 4294967295, %s2499_s28   ;;  %s2051_s30 = sadd.s32 4294967294, %s2499_s28   ;;  %s2499_s28 = sphi %s2552_s28, %s19_s28   ;;  %s2495_s27 = sphi %s2550_s27, %s4069_s27   ;;  %s2491_s26 = sphi %s2548_s26, %s4068_s26   ;;  %s2487_s25 = sphi %s2546_s25, %s4067_s25   ;;  %s2483_s24 = sphi %s2544_s24, %s4066_s24   ;;  %s2479_s23 = sphi %s2542_s23, %s4065_s23   ;;  %s2475_s22 = sphi %s2540_s22, %s4064_s22   ;;  %s2471_s21 = sphi %s2538_s21, %s4063_s21  }
   0x6   : > { %s28_s7 = sadd.s32 1, %s2491_s26  ;;  %s31_s8 = sadd.s32 1, %s2495_s27 }
   0x7   : > { %p29_p0 = scmp.ge.s32.totalorder %s28_s7, 2  ;;  %p181_p1 = scmp.ne.s32.totalorder %s2479_s23, %s2475_s22 }
   0x8   : > { %p182_p2 = scmp.eq.s32.totalorder %s2050_s29, 3  ;;  %p187_p5 = scmp.ne.s32.totalorder %s2475_s22, %s2471_s21 }
   0x9   : > { %s4071_s7 = smov (%p29_p0, %s28_s7), 0  ;;  %s4073_s8 = smov (!%p29_p0, %s31_s8), %s2495_s27 }
   0xa   : > { %s167_s9 = ssub.s32 %s2491_s26, %s4071_s7  ;;  %p2589_p3 = por %p182_p2, %p181_p1 }
   0xb   : > { %p33_p4 = scmp.ge.s32.totalorder %s4073_s8, 2  ;;  %p188_p6 = scmp.eq.s32.totalorder %s2051_s30, 3 }
   0xc   : > { %p2054_p7 = scmp.ge.s32.totalorder %s2499_s28, 1  ;;  %p229_p9 = scmp.lt.s32.totalorder %s2499_s28, 5 }
   0xd   : > { %s4075_s8 = smov (%p33_p4, %s4073_s8), 0  ;;  %p2598_p8 = por %p188_p6, %p187_p5 }
   0xe   : > { %s166_s12 = ssub.s32 %s2495_s27, %s4075_s8  ;;  %s171_s13 = sadd.s32 1, %s2479_s23 }
   0xf   : > { %s168_s14 = sor.u32 %s167_s9, %s166_s12  ;;  %p230_p10 = pnand %p2054_p7, %p229_p9 }
  0x10   : > { %p169_p11 = scmp.eq.s32.totalorder %s168_s14, 0 }
  0x11   : > { %233 = sbr.rel (%p230_p10) target bundleno = 687 (0x2af), region = 44 }
  0x12   : > { %s2607_s15 = scalar_select %p169_p11, %s2479_s23, %s171_s13  }
  0x16   : > { %v288_v0 = vld [vmem:[%s3928_s1 + $0x18] sm:$0xff]  ;;  %v287_v1 = vld [vmem:[%s3928_s1 + $0x10] sm:$0xff]  ;;  %p259_p12 = scmp.lt.s32.totalorder %s2487_s25, 1  ;;  %s2059_s20 = smul.u32 192, %s2483_s24  ;;  %v286_v2 = vld [vmem:[%s3928_s1 + $0x8] sm:$0xff]  ;;  %vm289_vm0 = vcmask 261120  }
  0x17   : > { %350 = vmatpush.msra.mxu0 %v288_v0  ;;  %v285_v3 = vld [vmem:[%s3928_s1] sm:$0xff]  ;;  %v2109_v18 = vld [vmem:[%s3931_s4 + $0x8] sm:$0xff]  ;;  %vm490_vm1 = vcmask 64512   ;;  %v2249_v40 = vld [vmem:[%s3931_s4 + $0x30] sm:$0xff]  ;;  %vm732_vm2 = vcmask 1046528   ;;  %vm893_vm3 = vcmask 1045504  }
  0x18   : > { %s260_s9 = scalar_select %p259_p12, %s2487_s25, 1  ;;  %v485_v17 = vld [vmem:[%s3931_s4] sm:$0xff]  ;;  %2312 = vmatpush.msra.mxu2 %v2109_v18  ;;  %v2169_v50 = vld [vmem:[%s3931_s4 + $0x18] sm:$0xff]  ;;  %v2127_v51 = vld [vmem:[%s3931_s4 + $0x10] sm:$0xff] }
  0x19   : > { %351 = vmatpush.msra.mxu0 %v287_v1  ;;  %554 = vmatpush.msra.mxu1 %v485_v17  ;;  %v2670_v22 = vld [vmem:[%s3929_s2] ss:$0 sm:$0xff]  ;;  %s2306_s12 = sshll.u32 %s2487_s25, 5 }
  0x1a   : > { %s2313_s14 = smul.u32 432, %s260_s9  ;;  %2311 = vmatpush.msra.mxu3 %v485_v17  ;;  %v2675_v23 = vld [vmem:[%s3930_s3] ss:$0 sm:$0xff]  ;;  %s2310_s9 = sshll.u32 %s2483_s24, 4 }
  0x1b   : > { %352 = vmatpush.msra.mxu0 %v286_v2  ;;  %v2187_v45 = vld [vmem:[%s3931_s4 + $0x20] sm:$0xff]  ;;  %1028 = vmatpush.msrb.mxu1 %v2169_v50  ;;  %s1958_s13 = sadd.s32 %s2310_s9, %s2306_s12 }
  0x1c   : > { %s263_s18 = scalar_lea.vmem %s3927_s0, %s2313_s14  ;;  %1132 = vmatpush.msrb.mxu2 %v2187_v45  ;;  %843 = vmatpush.msrb.mxu3 %v2127_v51  ;;  %s2307_s24 = sshll.u32 %s1958_s13, 3 }
  0x1d   : > { %353 = vmatpush.msra.mxu0 %v285_v3  ;;  %s2627_s19 = scalar_lea.vmem %s263_s18, %s2059_s20  ;;  %s256_s20 = sand.u32 1, %s2475_s22  }
  0x1e   : > { %v2060_v4 = vld [vmem:[%s2627_s19 + $0x19] sm:$0xff]  ;;  %v2061_v5 = vld [vmem:[%s2627_s19 + $0x21] sm:$0xff]  ;;  %v2062_v6 = vld [vmem:[%s2627_s19 + $0x31] sm:$0xff]  ;;  %s2055_s29 = sshll.u32 %s256_s20, 7  ;;  %s1960_s14 = scalar_lea.hbm %s3933_s6, %s2307_s24 }
  0x1f   : > { %2076 = vmatmul.msk.f32.vlgmr.msra.gmra.mxu0 %vm289_vm0, %v2060_v4  ;;  %v2063_v7 = vld [vmem:[%s2627_s19 + $0x39] sm:$0xff]  ;;  %v2064_v8 = vld [vmem:[%s2627_s19 + $0x49] sm:$0xff]  ;;  %v2065_v9 = vld [vmem:[%s2627_s19 + $0x51] sm:$0xff]  ;;  %s3673_s30 = scalar_lea.vmem [#allocation2], %s2055_s29  ;;  %s1963_s17 = sshll.u32 %s1960_s14, 4  ;;  %s1964_s17 = int_to_ptr.hbm [resolvable:$true] %s1963_s17 }
  0x20   : > { %v2066_v10 = vld [vmem:[%s2627_s19 + $0x61] sm:$0xff]  ;;  %v2067_v11 = vld [vmem:[%s2627_s19 + $0x69] sm:$0xff]  ;;  %v2068_v12 = vld [vmem:[%s2627_s19 + $0x79] sm:$0xff]  ;;  %658 = vmatpush.msrb.mxu0 %v2109_v18  ;;  %s1961_s16 = sshll.u32 %s3673_s30, 4  ;;  %s1946_s18 = scalar_lea.sflag [#allocation3], %s256_s20  ;;  %s1962_s16 = int_to_ptr.vmem [resolvable:$true] %s1961_s16 }
  0x21   : > { %v2069_v13 = vld [vmem:[%s2627_s19 + $0x81] sm:$0xff]  ;;  %v2070_v14 = vld [vmem:[%s2627_s19 + $0x91] sm:$0xff]  ;;  %v2071_v15 = vld [vmem:[%s2627_s19 + $0x99] sm:$0xff]  ;;  %s2419_s29 = sshra.s32 %s1964_s17, 4  ;;  %s2425_s24 = scalar_lea.hbm %s3933_s6, 512  ;;  %s2420_s29 = int_to_ptr.hbm [resolvable:$true] %s2419_s29 }
  0x22   : > { %v2072_v16 = vld [vmem:[%s2627_s19 + $0xa9] sm:$0xff]  ;;  %v2073_v19 = vld [vmem:[%s2627_s19 + $0xb1] sm:$0xff]  ;;  %v2074_v20 = vld [vmem:[%s2627_s19 + $0xc1] sm:$0xff]  ;;  %1503 = vmatpush.msra.mxu0 %v2249_v40  ;;  %s2421_s9 = scalar_lea.hbm %s2420_s29, 128  ;;  %p2426_p2 = scmp.lt.s32.totalorder %s2420_s29, %s3933_s6 }
  0x23   : > { %v2075_v21 = vld [vmem:[%s2627_s19 + $0xc9] sm:$0xff]  ;;  %p2422_p13 = scmp.ne.s32.totalorder %s2420_s29, %s2421_s9  ;;  %p2427_p4 = scmp.lt.s32.totalorder %s2425_s24, %s2421_s9 }
  0x24   : > { %v2205_v18 = vld [vmem:[%s3931_s4 + $0x28] sm:$0xff] }
  0x25   : > { %p2423_p0 = pnand %p2422_p13, %p2589_p3  ;;  %p2428_p5 = por %p2427_p4, %p2426_p2 }
  0x27   : > { %2077 = vmatmul.msk.f32.gmra.mxu0 %vm289_vm0, %v2061_v5  ;;  %p2424_p1 = pneg %p2423_p0 }
  0x29   : > { %p2429_p6 = pnand %p2428_p5, %p2424_p1 }
  0x2f   : > { %2078 = vmatmul.msk.f32.gmra.mxu0 %vm289_vm0, %v2062_v6 }
  0x37   : > { %2079 = vmatmul.msk.f32.gmra.mxu0 %vm289_vm0, %v2063_v7 }
  0x3f   : > { %2080 = vmatmul.msk.f32.gmra.mxu0 %vm289_vm0, %v2064_v8 }
  0x47   : > { %2081 = vmatmul.msk.f32.gmra.mxu0 %vm289_vm0, %v2065_v9 }
  0x4f   : > { %2082 = vmatmul.msk.f32.gmra.mxu0 %vm289_vm0, %v2066_v10 }
  0x57   : > { %2083 = vmatmul.msk.f32.gmra.mxu0 %vm289_vm0, %v2067_v11 }
  0x5f   : > { %2084 = vmatmul.msk.f32.gmra.mxu0 %vm289_vm0, %v2068_v12 }
  0x67   : > { %2085 = vmatmul.msk.f32.gmra.mxu0 %vm289_vm0, %v2069_v13 }
  0x6f   : > { %2086 = vmatmul.msk.f32.gmra.mxu0 %vm289_vm0, %v2070_v14 }
  0x77   : > { %2087 = vmatmul.msk.f32.gmra.mxu0 %vm289_vm0, %v2071_v15 }
  0x7f   : > { %2088 = vmatmul.msk.f32.gmra.mxu0 %vm289_vm0, %v2072_v16 }
  0x87   : > { %2089 = vmatmul.msk.f32.gmra.mxu0 %vm289_vm0, %v2073_v19 }
  0x8f   : > { %2090 = vmatmul.msk.f32.gmra.mxu0 %vm289_vm0, %v2074_v20 }
  0x97   : > { %2091 = vmatmul.msk.f32.gmra.mxu0 %vm289_vm0, %v2075_v21 }
  0x9c   : > { %v355_v24 = vpop.f32.mrf.mxu0 }
  0x9d   : > { %v407_v25 = vmul.f32 %v2670_v22, %v355_v24 }
  0x9f   : > { %v427_v26 = vadd.f32 %v2675_v23, %v407_v25  ;;  %v2285_v25 = vld [vmem:[%s3931_s4 + $0x40] sm:$0xff] }
  0xa1   : > { %v2679_v27 = vmax.f32 %v427_v26, 0.0  ;;  %v2267_v26 = vld [vmem:[%s3931_s4 + $0x38] sm:$0xff] }
  0xa3   : > { %2093 = vmatmul.msk.f32.vlgmr.msra.gmra.mxu1 %vm490_vm1, %v2679_v27  ;;  %2111 = vmatmul.msk.f32.vlgmr.msrb.gmra.mxu0 %vm490_vm1, %v2679_v27 }
  0xa4   : > { %v358_v28 = vpop.f32.mrf.mxu0  ;;  %1607 = vmatpush.msra.mxu1 %v2267_v26 }
  0xa5   : > { %v408_v29 = vmul.f32 %v2670_v22, %v358_v28 }
  0xa7   : > { %v428_v30 = vadd.f32 %v2675_v23, %v408_v29 }
  0xa9   : > { %v2687_v31 = vmax.f32 %v428_v30, 0.0 }
  0xab   : > { %2094 = vmatmul.msk.f32.gmra.mxu1 %vm490_vm1, %v2687_v31  ;;  %2112 = vmatmul.msk.f32.gmra.mxu0 %vm490_vm1, %v2687_v31 }
  0xac   : > { %v361_v32 = vpop.f32.mrf.mxu0 }
  0xad   : > { %v409_v33 = vmul.f32 %v2670_v22, %v361_v32 }
  0xaf   : > { %v429_v34 = vadd.f32 %v2675_v23, %v409_v33 }
  0xb1   : > { %v2695_v35 = vmax.f32 %v429_v34, 0.0 }
  0xb3   : > { %2095 = vmatmul.msk.f32.gmra.mxu1 %vm490_vm1, %v2695_v35  ;;  %2113 = vmatmul.msk.f32.gmra.mxu0 %vm490_vm1, %v2695_v35 }
  0xb4   : > { %v364_v36 = vpop.f32.mrf.mxu0 }
  0xb5   : > { %v410_v37 = vmul.f32 %v2670_v22, %v364_v36 }
  0xb7   : > { %v430_v38 = vadd.f32 %v2675_v23, %v410_v37 }
  0xb9   : > { %v2703_v39 = vmax.f32 %v430_v38, 0.0 }
  0xbb   : > { %2096 = vmatmul.msk.f32.gmra.mxu1 %vm490_vm1, %v2703_v39  ;;  %2114 = vmatmul.msk.f32.gmra.mxu0 %vm490_vm1, %v2703_v39 }
  0xbc   : > { %v367_v41 = vpop.f32.mrf.mxu0 }
  0xbd   : > { %v411_v42 = vmul.f32 %v2670_v22, %v367_v41 }
  0xbf   : > { %v431_v43 = vadd.f32 %v2675_v23, %v411_v42 }
  0xc1   : > { %v2714_v44 = vmax.f32 %v431_v43, 0.0 }
  0xc3   : > { %2097 = vmatmul.msk.f32.gmra.mxu1 %vm490_vm1, %v2714_v44  ;;  %2115 = vmatmul.msk.f32.gmra.mxu0 %vm490_vm1, %v2714_v44 }
  0xc4   : > { %v370_v46 = vpop.f32.mrf.mxu0 }
  0xc5   : > { %v412_v47 = vmul.f32 %v2670_v22, %v370_v46 }
  0xc7   : > { %v432_v48 = vadd.f32 %v2675_v23, %v412_v47  ;;  %v2949_v47 = vld [vmem:[%s2627_s19 + $0x70] sm:$0x3] }
  0xc8   : > { %3978 = vst [vmem:[#allocation7_spill] sm:$0xff] %v2949_v47  ;;  %v756_v51 = vrot.slane %v2949_v47, 1 }
  0xc9   : > { %v2725_v49 = vmax.f32 %v432_v48, 0.0  ;;  %v2952_v48 = vld [vmem:[%s2627_s19 + $0x68] sm:$0xff] }
  0xcb   : > { %2098 = vmatmul.msk.f32.gmra.mxu1 %vm490_vm1, %v2725_v49  ;;  %2116 = vmatmul.msk.f32.gmra.mxu0 %vm490_vm1, %v2725_v49 }
  0xcc   : > { %v373_v52 = vpop.f32.mrf.mxu0 }
  0xcd   : > { %v413_v53 = vmul.f32 %v2670_v22, %v373_v52  ;;  %v2962_v52 = vrot.slane %v2952_v48, 1 }
  0xcf   : > { %v433_v54 = vadd.f32 %v2675_v23, %v413_v53  ;;  %v2969_v53 = vld [vmem:[%s3932_s5] ss:$0 sm:$0xff] }
  0xd1   : > { %v2739_v55 = vmax.f32 %v433_v54, 0.0  ;;  %v2974_v54 = vld [vmem:[%s3932_s5 + $0x1] ss:$0 sm:$0xff] }
  0xd3   : > { %2099 = vmatmul.msk.f32.gmra.mxu1 %vm490_vm1, %v2739_v55  ;;  %2117 = vmatmul.msk.f32.gmra.mxu0 %vm490_vm1, %v2739_v55 }
  0xd4   : > { %v376_v56 = vpop.f32.mrf.mxu0 }
  0xd5   : > { %v414_v57 = vmul.f32 %v2670_v22, %v376_v56 }
  0xd7   : > { %v434_v58 = vadd.f32 %v2675_v23, %v414_v57 }
  0xd9   : > { %v2747_v59 = vmax.f32 %v434_v58, 0.0  ;;  %v757_v58 = vsel %vm732_vm2, %v2962_v52, %v756_v51  ;;  %v3031_v51 = vld [vmem:[%s2627_s19 + $0x98] sm:$0xff] }
  0xda   : > { %3987 = vst [vmem:[#allocation16_spill] sm:$0xff] %v3031_v51 }
  0xdb   : > { %2100 = vmatmul.msk.f32.gmra.mxu1 %vm490_vm1, %v2747_v59  ;;  %2118 = vmatmul.msk.f32.vlgmr.msra.gmra.mxu2 %vm490_vm1, %v2747_v59 }
  0xdc   : > { %2251 = vmatmul.msk.f32.vlgmr.msra.gmra.mxu0 %vm490_vm1, %v2679_v27  ;;  %v379_v60 = vpop.f32.mrf.mxu0  ;;  %1791 = vmatpush.msra.mxu2 %v2285_v25 }
  0xdd   : > { %v415_v61 = vmul.f32 %v2670_v22, %v379_v60 }
  0xdf   : > { %v435_v62 = vadd.f32 %v2675_v23, %v415_v61 }
  0xe1   : > { %v2757_v63 = vmax.f32 %v435_v62, 0.0  ;;  %v2981_v62 = vld [vmem:[%s2627_s19 + $0x78] sm:$0xff] }
  0xe2   : > { %3979 = vst [vmem:[#allocation8_spill] sm:$0xff] %v2981_v62 }
  0xe3   : > { %2101 = vmatmul.msk.f32.gmra.mxu1 %vm490_vm1, %v2757_v63  ;;  %2119 = vmatmul.msk.f32.gmra.mxu2 %vm490_vm1, %v2757_v63 }
  0xe4   : > { %2252 = vmatmul.msk.f32.gmra.mxu0 %vm490_vm1, %v2687_v31  ;;  %v382_v0 = vpop.f32.mrf.mxu0 }
  0xe5   : > { %v416_v1 = vmul.f32 %v2670_v22, %v382_v0  ;;  %v2984_v0 = vld [vmem:[%s2627_s19 + $0x80] sm:$0xff] }
  0xe6   : > { %3980 = vst [vmem:[#allocation9_spill] sm:$0xff] %v2984_v0 }
  0xe7   : > { %v436_v2 = vadd.f32 %v2675_v23, %v416_v1 }
  0xe9   : > { %v2767_v3 = vmax.f32 %v436_v2, 0.0 }
  0xeb   : > { %2102 = vmatmul.msk.f32.vlgmr.msra.gmra.mxu3 %vm490_vm1, %v2767_v3  ;;  %2120 = vmatmul.msk.f32.gmra.mxu2 %vm490_vm1, %v2767_v3 }
  0xec   : > { %2171 = vmatmul.msk.f32.vlgmr.msrb.gmra.mxu1 %vm490_vm1, %v2679_v27  ;;  %2253 = vmatmul.msk.f32.gmra.mxu0 %vm490_vm1, %v2695_v35  ;;  %v385_v4 = vpop.f32.mrf.mxu0 }
  0xed   : > { %v417_v5 = vmul.f32 %v2670_v22, %v385_v4  ;;  %1316 = vmatpush.msra.mxu3 %v2205_v18 }
  0xef   : > { %v437_v6 = vadd.f32 %v2675_v23, %v417_v5  ;;  %v758_v5 = vrot.slane %v2981_v62, 1 }
  0xf1   : > { %v2779_v7 = vmax.f32 %v437_v6, 0.0  ;;  %v2991_v6 = vrot.slane %v2984_v0, 1 }
  0xf3   : > { %2103 = vmatmul.msk.f32.gmra.mxu3 %vm490_vm1, %v2779_v7  ;;  %2121 = vmatmul.msk.f32.gmra.mxu2 %vm490_vm1, %v2779_v7  ;;  %3981 = vst [vmem:[#allocation10_spill] sm:$0xff] %v2991_v6 }
  0xf4   : > { %2172 = vmatmul.msk.f32.gmra.mxu1 %vm490_vm1, %v2687_v31  ;;  %2254 = vmatmul.msk.f32.gmra.mxu0 %vm490_vm1, %v2703_v39  ;;  %v388_v8 = vpop.f32.mrf.mxu0 }
  0xf5   : > { %v418_v9 = vmul.f32 %v2670_v22, %v388_v8 }
  0xf7   : > { %v438_v10 = vadd.f32 %v2675_v23, %v418_v9 }
  0xf9   : > { %v2791_v11 = vmax.f32 %v438_v10, 0.0 }
  0xfb   : > { %2104 = vmatmul.msk.f32.gmra.mxu3 %vm490_vm1, %v2791_v11  ;;  %2122 = vmatmul.msk.f32.gmra.mxu2 %vm490_vm1, %v2791_v11 }
  0xfc   : > { %2173 = vmatmul.msk.f32.gmra.mxu1 %vm490_vm1, %v2695_v35  ;;  %2255 = vmatmul.msk.f32.gmra.mxu0 %vm490_vm1, %v2714_v44  ;;  %v391_v12 = vpop.f32.mrf.mxu0 }
  0xfd   : > { %v419_v13 = vmul.f32 %v2670_v22, %v391_v12  ;;  %v3003_v12 = vsel %vm732_vm2, %v758_v5, %v2991_v6 }
  0xfe   : > { %3983 = vst [vmem:[#allocation12_spill] sm:$0xff] %v3003_v12 }
  0xff   : > { %v439_v14 = vadd.f32 %v2675_v23, %v419_v13 }
 0x101   : > { %v2803_v15 = vmax.f32 %v439_v14, 0.0 }
 0x103   : > { %2105 = vmatmul.msk.f32.gmra.mxu3 %vm490_vm1, %v2803_v15  ;;  %2123 = vmatmul.msk.f32.gmra.mxu2 %vm490_vm1, %v2803_v15 }
 0x104   : > { %2174 = vmatmul.msk.f32.gmra.mxu1 %vm490_vm1, %v2703_v39  ;;  %2256 = vmatmul.msk.f32.gmra.mxu0 %vm490_vm1, %v2725_v49  ;;  %v394_v16 = vpop.f32.mrf.mxu0 }
 0x105   : > { %v420_v17 = vmul.f32 %v2670_v22, %v394_v16  ;;  %v3008_v16 = vld [vmem:[%s2627_s19 + $0x88] sm:$0x3] }
 0x106   : > { %3984 = vst [vmem:[#allocation13_spill] sm:$0xff] %v3008_v16 }
 0x107   : > { %v440_v19 = vadd.f32 %v2675_v23, %v420_v17 }
 0x109   : > { %v2818_v20 = vmax.f32 %v440_v19, 0.0  ;;  %v761_v19 = vrot.slane %v3008_v16, 1  ;;  %v463_v16 = vld [vmem:[%s2627_s19 + $0x10] sm:$0x3] }
 0x10a   : > { %v897_v47 = vrot.slane %v463_v16, 2 }
 0x10b   : > { %2106 = vmatmul.msk.f32.gmra.mxu3 %vm490_vm1, %v2818_v20  ;;  %2124 = vmatmul.msk.f32.gmra.mxu2 %vm490_vm1, %v2818_v20 }
 0x10c   : > { %2175 = vmatmul.msk.f32.gmra.mxu1 %vm490_vm1, %v2714_v44  ;;  %2257 = vmatmul.msk.f32.gmra.mxu0 %vm490_vm1, %v2739_v55  ;;  %v397_v21 = vpop.f32.mrf.mxu0 }
 0x10d   : > { %v421_v24 = vmul.f32 %v2670_v22, %v397_v21 }
 0x10f   : > { %v441_v28 = vadd.f32 %v2675_v23, %v421_v24 }
 0x111   : > { %v2836_v29 = vmax.f32 %v441_v28, 0.0  ;;  %v762_v28 = vsel %vm732_vm2, %v2991_v6, %v761_v19 }
 0x113   : > { %2107 = vmatmul.msk.f32.gmra.mxu3 %vm490_vm1, %v2836_v29  ;;  %2125 = vmatmul.msk.f32.gmra.mxu2 %vm490_vm1, %v2836_v29 }
 0x114   : > { %2176 = vmatmul.msk.f32.gmra.mxu1 %vm490_vm1, %v2725_v49  ;;  %2258 = vmatmul.msk.f32.gmra.mxu0 %vm490_vm1, %v2747_v59  ;;  %v400_v30 = vpop.f32.mrf.mxu0 }
 0x115   : > { %v422_v32 = vmul.f32 %v2670_v22, %v400_v30 }
 0x117   : > { %v442_v33 = vadd.f32 %v2675_v23, %v422_v32 }
 0x119   : > { %v2848_v34 = vmax.f32 %v442_v33, 0.0  ;;  %v3028_v33 = vld [vmem:[%s2627_s19 + $0x90] sm:$0xff] }
 0x11a   : > { %3986 = vst [vmem:[#allocation15_spill] sm:$0xff] %v3028_v33 }
 0x11b   : > { %3976 = vst [vmem:[#allocation5_spill] sm:$0xff] %v2848_v34  ;;  %2108 = vmatmul.msk.f32.gmra.mxu3 %vm490_vm1, %v2848_v34  ;;  %2126 = vmatmul.msk.f32.gmra.mxu2 %vm490_vm1, %v2848_v34 }
 0x11c   : > { %2177 = vmatmul.msk.f32.gmra.mxu1 %vm490_vm1, %v2739_v55  ;;  %2259 = vmatmul.msk.f32.gmra.mxu0 %vm490_vm1, %v2757_v63 }
 0x120   : > { %v2858_v36 = vpop.f32.mrf.mxu1 }
 0x123   : > { %2129 = vmatmul.msk.f32.vlgmr.msrb.gmra.mxu3 %vm490_vm1, %v2679_v27  ;;  %2189 = vmatmul.msk.f32.vlgmr.msrb.gmra.mxu2 %vm490_vm1, %v2679_v27 }
 0x124   : > { %2178 = vmatmul.msk.f32.gmra.mxu1 %vm490_vm1, %v2747_v59  ;;  %2260 = vmatmul.msk.f32.gmra.mxu0 %vm490_vm1, %v2767_v3 }
 0x128   : > { %v2868_v22 = vpop.f32.mrf.mxu1 }
 0x12b   : > { %2130 = vmatmul.msk.f32.gmra.mxu3 %vm490_vm1, %v2687_v31  ;;  %2190 = vmatmul.msk.f32.gmra.mxu2 %vm490_vm1, %v2687_v31 }
 0x12c   : > { %2179 = vmatmul.msk.f32.gmra.mxu1 %vm490_vm1, %v2757_v63  ;;  %2261 = vmatmul.msk.f32.gmra.mxu0 %vm490_vm1, %v2779_v7 }
 0x130   : > { %v2878_v23 = vpop.f32.mrf.mxu1 }
 0x133   : > { %2131 = vmatmul.msk.f32.gmra.mxu3 %vm490_vm1, %v2695_v35  ;;  %2191 = vmatmul.msk.f32.gmra.mxu2 %vm490_vm1, %v2695_v35 }
 0x134   : > { %2180 = vmatmul.msk.f32.gmra.mxu1 %vm490_vm1, %v2767_v3  ;;  %2262 = vmatmul.msk.f32.gmra.mxu0 %vm490_vm1, %v2791_v11 }
 0x138   : > { %v2888_v37 = vpop.f32.mrf.mxu1 }
 0x13b   : > { %2132 = vmatmul.msk.f32.gmra.mxu3 %vm490_vm1, %v2703_v39  ;;  %2192 = vmatmul.msk.f32.gmra.mxu2 %vm490_vm1, %v2703_v39 }
 0x13c   : > { %2181 = vmatmul.msk.f32.gmra.mxu1 %vm490_vm1, %v2779_v7  ;;  %2263 = vmatmul.msk.f32.gmra.mxu0 %vm490_vm1, %v2803_v15 }
 0x140   : > { %v2898_v38 = vpop.f32.mrf.mxu1 }
 0x143   : > { %2133 = vmatmul.msk.f32.gmra.mxu3 %vm490_vm1, %v2714_v44  ;;  %2193 = vmatmul.msk.f32.gmra.mxu2 %vm490_vm1, %v2714_v44 }
 0x144   : > { %2182 = vmatmul.msk.f32.gmra.mxu1 %vm490_vm1, %v2791_v11  ;;  %2264 = vmatmul.msk.f32.gmra.mxu0 %vm490_vm1, %v2818_v20 }
 0x148   : > { %v2908_v40 = vpop.f32.mrf.mxu1 }
 0x14b   : > { %2134 = vmatmul.msk.f32.gmra.mxu3 %vm490_vm1, %v2725_v49  ;;  %2194 = vmatmul.msk.f32.gmra.mxu2 %vm490_vm1, %v2725_v49 }
 0x14c   : > { %2183 = vmatmul.msk.f32.gmra.mxu1 %vm490_vm1, %v2803_v15  ;;  %2265 = vmatmul.msk.f32.gmra.mxu0 %vm490_vm1, %v2836_v29 }
 0x150   : > { %v2918_v41 = vpop.f32.mrf.mxu1 }
 0x153   : > { %2135 = vmatmul.msk.f32.gmra.mxu3 %vm490_vm1, %v2739_v55  ;;  %2195 = vmatmul.msk.f32.gmra.mxu2 %vm490_vm1, %v2739_v55 }
 0x154   : > { %2184 = vmatmul.msk.f32.gmra.mxu1 %vm490_vm1, %v2818_v20  ;;  %2266 = vmatmul.msk.f32.gmra.mxu0 %vm490_vm1, %v2848_v34 }
 0x158   : > { %v2928_v42 = vpop.f32.mrf.mxu1 }
 0x15b   : > { %2136 = vmatmul.msk.f32.gmra.mxu3 %vm490_vm1, %v2747_v59  ;;  %2196 = vmatmul.msk.f32.gmra.mxu2 %vm490_vm1, %v2747_v59 }
 0x15c   : > { %2185 = vmatmul.msk.f32.gmra.mxu1 %vm490_vm1, %v2836_v29 }
 0x15e   : > { %v2936_v43 = vpop.f32.mrf.mxu2 }
 0x160   : > { %v2938_v45 = vpop.f32.mrf.mxu1 }
 0x161   : > { %3977 = vst [vmem:[#allocation6_spill] sm:$0xff] %v2938_v45 }
 0x163   : > { %2137 = vmatmul.msk.f32.gmra.mxu3 %vm490_vm1, %v2757_v63  ;;  %2197 = vmatmul.msk.f32.gmra.mxu2 %vm490_vm1, %v2757_v63 }
 0x164   : > { %2186 = vmatmul.msk.f32.gmra.mxu1 %vm490_vm1, %v2848_v34 }
 0x166   : > { %v2946_v46 = vpop.f32.mrf.mxu2 }
 0x169   : > { %v2954_v50 = vpop.f32.mrf.mxu1 }
 0x16b   : > { %2138 = vmatmul.msk.f32.gmra.mxu3 %vm490_vm1, %v2767_v3  ;;  %2198 = vmatmul.msk.f32.gmra.mxu2 %vm490_vm1, %v2767_v3 }
 0x16c   : > { %2269 = vmatmul.msk.f32.vlgmr.msra.gmra.mxu1 %vm490_vm1, %v2679_v27 }
 0x16e   : > { %v583_v56 = vpop.f32.mrf.mxu3  ;;  %v687_v57 = vpop.f32.mrf.mxu2 }
 0x16f   : > { %v584_v60 = vadd.f32 %v2969_v53, %v583_v56  ;;  %v688_v61 = vadd.f32 %v2974_v54, %v687_v57 }
 0x171   : > { %v613_v1 = vmul.f32 %v584_v60, %v2952_v48  ;;  %v798_v2 = vmul.f32 %v757_v58, %v688_v61  ;;  %v2987_v4 = vpop.f32.mrf.mxu1  ;;  %v763_v58 = vrot.slane %v3028_v33, 1  ;;  %v3036_v60 = vrot.slane %v3031_v51, 1 }
 0x173   : > { %v2993_v8 = vadd.f32 %v798_v2, %v613_v1  ;;  %2139 = vmatmul.msk.f32.gmra.mxu3 %vm490_vm1, %v2779_v7  ;;  %2199 = vmatmul.msk.f32.gmra.mxu2 %vm490_vm1, %v2779_v7  ;;  %3988 = vst [vmem:[#allocation17_spill] sm:$0xff] %v3036_v60 }
 0x174   : > { %2270 = vmatmul.msk.f32.gmra.mxu1 %vm490_vm1, %v2687_v31 }
 0x175   : > { %3982 = vst [vmem:[#allocation11_spill] sm:$0xff] %v2993_v8 }
 0x176   : > { %v586_v9 = vpop.f32.mrf.mxu3  ;;  %v690_v10 = vpop.f32.mrf.mxu2 }
 0x177   : > { %v587_v13 = vadd.f32 %v2969_v53, %v586_v9  ;;  %v691_v14 = vadd.f32 %v2974_v54, %v690_v10  ;;  %v3050_v9 = vsel %vm732_vm2, %v763_v58, %v3036_v60  ;;  %v3075_v58 = vld [vmem:[%s2627_s19 + $0xa8] sm:$0xff] }
 0x178   : > { %3990 = vst [vmem:[#allocation19_spill] sm:$0xff] %v3050_v9 }
 0x179   : > { %v614_v17 = vmul.f32 %v587_v13, %v2981_v62  ;;  %v799_v18 = vmul.f32 %v3003_v12, %v691_v14  ;;  %v3015_v24 = vpop.f32.mrf.mxu1  ;;  %v3055_v14 = vld [vmem:[%s2627_s19 + $0xa0] sm:$0x3]  ;;  %3993 = vst [vmem:[#allocation22_spill] sm:$0xff] %v3075_v58 }
 0x17a   : > { %3991 = vst [vmem:[#allocation20_spill] sm:$0xff] %v3055_v14  ;;  %v766_v19 = vrot.slane %v3055_v14, 1 }
 0x17b   : > { %v3013_v21 = vadd.f32 %v799_v18, %v614_v17  ;;  %2140 = vmatmul.msk.f32.gmra.mxu3 %vm490_vm1, %v2791_v11  ;;  %2200 = vmatmul.msk.f32.gmra.mxu2 %vm490_vm1, %v2791_v11 }
 0x17c   : > { %2271 = vmatmul.msk.f32.gmra.mxu1 %vm490_vm1, %v2695_v35 }
 0x17d   : > { %3985 = vst [vmem:[#allocation14_spill] sm:$0xff] %v3013_v21 }
 0x17e   : > { %v589_v25 = vpop.f32.mrf.mxu3  ;;  %v693_v26 = vpop.f32.mrf.mxu2 }
 0x17f   : > { %v590_v30 = vadd.f32 %v2969_v53, %v589_v25  ;;  %v694_v32 = vadd.f32 %v2974_v54, %v693_v26 }
 0x181   : > { %v615_v56 = vmul.f32 %v590_v30, %v2984_v0  ;;  %v800_v57 = vmul.f32 %v762_v28, %v694_v32  ;;  %v3046_v1 = vpop.f32.mrf.mxu1  ;;  %v767_v30 = vsel %vm732_vm2, %v3036_v60, %v766_v19  ;;  %v3109_v60 = vld [vmem:[%s2627_s19 + $0x8] sm:$0xff] }
 0x183   : > { %v3038_v61 = vadd.f32 %v800_v57, %v615_v56  ;;  %2141 = vmatmul.msk.f32.gmra.mxu3 %vm490_vm1, %v2803_v15  ;;  %2201 = vmatmul.msk.f32.gmra.mxu2 %vm490_vm1, %v2803_v15 }
 0x184   : > { %2272 = vmatmul.msk.f32.gmra.mxu1 %vm490_vm1, %v2703_v39 }
 0x185   : > { %3989 = vst [vmem:[#allocation18_spill] sm:$0xff] %v3038_v61  ;;  %v461_v61 = vld [vmem:[%s2627_s19] sm:$0xff] }
 0x186   : > { %v592_v2 = vpop.f32.mrf.mxu3  ;;  %v696_v5 = vpop.f32.mrf.mxu2  ;;  %v894_v21 = vrot.slane %v461_v61, 2 }
 0x187   : > { %v593_v10 = vadd.f32 %v2969_v53, %v592_v2  ;;  %v697_v13 = vadd.f32 %v2974_v54, %v696_v5  ;;  %v3078_v2 = vld [vmem:[%s2627_s19 + $0xb0] sm:$0xff]  ;;  %v660_v5 = vpop.f32.mrf.mxu0 }
 0x188   : > { %3994 = vst [vmem:[#allocation23_spill] sm:$0xff] %v3078_v2 }
 0x189   : > { %v616_v17 = vmul.f32 %v593_v10, %v3028_v33  ;;  %v801_v18 = vmul.f32 %v3050_v9, %v697_v13  ;;  %v3070_v32 = vpop.f32.mrf.mxu1 }
 0x18b   : > { %v3060_v25 = vadd.f32 %v801_v18, %v616_v17  ;;  %2142 = vmatmul.msk.f32.gmra.mxu3 %vm490_vm1, %v2818_v20  ;;  %2202 = vmatmul.msk.f32.gmra.mxu2 %vm490_vm1, %v2818_v20  ;;  %v768_v17 = vrot.slane %v3075_v58, 1  ;;  %v3083_v18 = vrot.slane %v3078_v2, 1 }
 0x18c   : > { %2273 = vmatmul.msk.f32.gmra.mxu1 %vm490_vm1, %v2714_v44 }
 0x18d   : > { %3992 = vst [vmem:[#allocation21_spill] sm:$0xff] %v3060_v25 }
 0x18e   : > { %v595_v26 = vpop.f32.mrf.mxu3  ;;  %v699_v28 = vpop.f32.mrf.mxu2  ;;  %3995 = vst [vmem:[#allocation24_spill] sm:$0xff] %v3083_v18 }
 0x18f   : > { %v596_v56 = vadd.f32 %v2969_v53, %v595_v26  ;;  %v700_v57 = vadd.f32 %v2974_v54, %v699_v28 }
 0x191   : > { %v617_v10 = vmul.f32 %v596_v56, %v3031_v51  ;;  %v802_v13 = vmul.f32 %v767_v30, %v700_v57  ;;  %v3095_v30 = vsel %vm732_vm2, %v768_v17, %v3083_v18  ;;  %v663_v51 = vpop.f32.mrf.mxu0 }
 0x192   : > { %3997 = vst [vmem:[#allocation26_spill] sm:$0xff] %v3095_v30 }
 0x193   : > { %v3085_v19 = vadd.f32 %v802_v13, %v617_v10  ;;  %2143 = vmatmul.msk.f32.gmra.mxu3 %vm490_vm1, %v2836_v29  ;;  %2203 = vmatmul.msk.f32.gmra.mxu2 %vm490_vm1, %v2836_v29  ;;  %v3100_v10 = vld [vmem:[%s2627_s19 + $0xb8] sm:$0x3]  ;;  %v3102_v13 = vpop.f32.mrf.mxu1 }
 0x194   : > { %2274 = vmatmul.msk.f32.gmra.mxu1 %vm490_vm1, %v2725_v49  ;;  %3998 = vst [vmem:[#allocation27_spill] sm:$0xff] %v3100_v10  ;;  %v771_v14 = vrot.slane %v3100_v10, 1 }
 0x195   : > { %3996 = vst [vmem:[#allocation25_spill] sm:$0xff] %v3085_v19 }
 0x196   : > { %v598_v26 = vpop.f32.mrf.mxu3  ;;  %v702_v28 = vpop.f32.mrf.mxu2  ;;  %v772_v10 = vsel %vm732_vm2, %v3083_v18, %v771_v14  ;;  %v895_v14 = vrot.slane %v3109_v60, 2 }
 0x197   : > { %v599_v56 = vadd.f32 %v2969_v53, %v598_v26  ;;  %v703_v57 = vadd.f32 %v2974_v54, %v702_v28  ;;  %v733_v26 = vrot.slane %v461_v61, 1  ;;  %v734_v28 = vrot.slane %v3109_v60, 1 }
 0x198   : > { %v896_v18 = vsel %vm893_vm3, %v894_v21, %v895_v14 }
 0x199   : > { %v618_v19 = vmul.f32 %v599_v56, %v3075_v58  ;;  %v803_v25 = vmul.f32 %v3095_v30, %v703_v57  ;;  %v661_v30 = vadd.f32 %v2974_v54, %v660_v5  ;;  %v735_v33 = vsel %vm732_vm2, %v733_v26, %v734_v28  ;;  %v3147_v5 = vld [vmem:[%s3932_s5 + $0x2] ss:$0 sm:$0xff] }
 0x19b   : > { %v3111_v17 = vadd.f32 %v803_v25, %v618_v19  ;;  %2144 = vmatmul.msk.f32.gmra.mxu3 %vm490_vm1, %v2848_v34  ;;  %2204 = vmatmul.msk.f32.gmra.mxu2 %vm490_vm1, %v2848_v34  ;;  %v789_v26 = vmul.f32 %v735_v33, %v661_v30  ;;  %v664_v30 = vadd.f32 %v2974_v54, %v663_v51 }
 0x19c   : > { %2275 = vmatmul.msk.f32.gmra.mxu1 %vm490_vm1, %v2739_v55 }
 0x19d   : > { %3999 = vst [vmem:[#allocation28_spill] sm:$0xff] %v3111_v17  ;;  %v557_v17 = vadd.f32 %v2969_v53, %v2858_v36 }
 0x19e   : > { %v601_v56 = vpop.f32.mrf.mxu3  ;;  %v705_v57 = vpop.f32.mrf.mxu2 }
 0x19f   : > { %v602_v25 = vadd.f32 %v2969_v53, %v601_v56  ;;  %v706_v19 = vadd.f32 %v2974_v54, %v705_v57  ;;  %v3134_v56 = vld [vmem:[%s3932_s5 + $0x3] ss:$0 sm:$0xff]  ;;  %v3136_v57 = vpop.f32.mrf.mxu1 }
 0x1a0   : > { %v1031_v8 = vadd.f32 %v3134_v56, %v2954_v50 }
 0x1a1   : > { %v619_v58 = vmul.f32 %v602_v25, %v3078_v2  ;;  %v804_v9 = vmul.f32 %v772_v10, %v706_v19  ;;  %v604_v10 = vmul.f32 %v557_v17, %v461_v61  ;;  %v736_v25 = vrot.slane %v463_v16, 1  ;;  %v666_v19 = vpop.f32.mrf.mxu0 }
 0x1a2   : > { %v560_v61 = vadd.f32 %v2969_v53, %v2868_v22  ;;  %v3175_v22 = vld [vmem:[%s2627_s19 + $0x28] sm:$0x3] }
 0x1a3   : > { %v3138_v36 = vadd.f32 %v804_v9, %v619_v58  ;;  %2207 = vmatmul.msk.f32.vlgmr.msra.gmra.mxu3 %vm490_vm1, %v2679_v27  ;;  %2287 = vmatmul.msk.f32.vlgmr.msra.gmra.mxu2 %vm490_vm1, %v2679_v27  ;;  %v464_v9 = vld [vmem:[%s2627_s19 + $0x18] sm:$0xff]  ;;  %v3153_v58 = vld [vmem:[%s2627_s19 + $0x20] sm:$0xff]  ;;  %v805_v0 = vadd.f32 %v789_v26, %v604_v10  ;;  %v737_v12 = vsel %vm732_vm2, %v734_v28, %v736_v25 }
 0x1a4   : > { %2276 = vmatmul.msk.f32.gmra.mxu1 %vm490_vm1, %v2747_v59  ;;  %v3158_v27 = vld [vmem:[%s3932_s5 + $0x4] ss:$0 sm:$0xff]  ;;  %v738_v17 = vrot.slane %v464_v9, 1  ;;  %v739_v6 = vrot.slane %v3153_v58, 1  ;;  %v1078_v34 = vmul.f32 %v1031_v8, %v464_v9  ;;  %v605_v50 = vmul.f32 %v560_v61, %v3109_v60 }
 0x1a5   : > { %4000 = vst [vmem:[#allocation29_spill] sm:$0xff] %v3138_v36  ;;  %v790_v51 = vmul.f32 %v737_v12, %v664_v30  ;;  %v1034_v12 = vadd.f32 %v3134_v56, %v2987_v4  ;;  %v563_v25 = vadd.f32 %v2969_v53, %v2878_v23  ;;  %v3197_v4 = vrot.slane %v3153_v58, 2 }
 0x1a6   : > { %v845_v36 = vpop.f32.mrf.mxu3  ;;  %v1134_v2 = vpop.f32.mrf.mxu2 }
 0x1a7   : > { %v846_v33 = vadd.f32 %v3147_v5, %v845_v36  ;;  %v1135_v21 = vadd.f32 %v3158_v27, %v1134_v2  ;;  %v740_v36 = vsel %vm732_vm2, %v738_v17, %v739_v6  ;;  %v3181_v16 = vpop.f32.mrf.mxu1  ;;  %v898_v2 = vsel %vm893_vm3, %v895_v14, %v897_v47 }
 0x1a8   : > { %v806_v26 = vadd.f32 %v790_v51, %v605_v50  ;;  %v1079_v30 = vmul.f32 %v1034_v12, %v3153_v58  ;;  %v3207_v50 = vld [vmem:[%s2627_s19 + $0x30] sm:$0xff]  ;;  %v3210_v51 = vld [vmem:[%s2627_s19 + $0x38] sm:$0xff] }
 0x1a9   : > { %v950_v62 = vmul.f32 %v896_v18, %v846_v33  ;;  %v669_v28 = vpop.f32.mrf.mxu0  ;;  %v899_v33 = vrot.slane %v464_v9, 2 }
 0x1ab   : > { %v966_v45 = vadd.f32 %v950_v62, %v805_v0  ;;  %2208 = vmatmul.msk.f32.gmra.mxu3 %vm490_vm1, %v2687_v31  ;;  %2288 = vmatmul.msk.f32.gmra.mxu2 %vm490_vm1, %v2687_v31  ;;  %v1262_v0 = vmul.f32 %v1135_v21, %v740_v36  ;;  %v1209_v31 = vrot.slane %v3175_v22, 1 }
 0x1ac   : > { %2277 = vmatmul.msk.f32.gmra.mxu1 %vm490_vm1, %v2757_v63 }
 0x1ad   : > { %v1094_v62 = vadd.f32 %v1078_v34, %v966_v45  ;;  %v667_v34 = vadd.f32 %v2974_v54, %v666_v19  ;;  %v466_v45 = vld [vmem:[%s2627_s19 + $0x28] sm:$0x3]  ;;  %v1210_v61 = vsel %vm732_vm2, %v739_v6, %v1209_v31  ;;  %v606_v19 = vmul.f32 %v563_v25, %v464_v9 }
 0x1ae   : > { %v848_v8 = vpop.f32.mrf.mxu3  ;;  %v1137_v18 = vpop.f32.mrf.mxu2  ;;  %v741_v23 = vrot.slane %v466_v45, 1  ;;  %v3228_v25 = vrot.slane %v3210_v51, 1 }
 0x1af   : > { %v3187_v60 = vadd.f32 %v1262_v0, %v1094_v62  ;;  %v849_v10 = vadd.f32 %v3147_v5, %v848_v8  ;;  %v1138_v14 = vadd.f32 %v3158_v27, %v1137_v18  ;;  %v791_v21 = vmul.f32 %v740_v36, %v667_v34  ;;  %v3218_v31 = vpop.f32.mrf.mxu1 }
 0x1b0   : > { %v566_v36 = vadd.f32 %v2969_v53, %v2888_v37  ;;  %v3239_v37 = vld [vmem:[%s2627_s19 + $0x40] sm:$0x3] }
 0x1b1   : > { %v951_v47 = vmul.f32 %v898_v2, %v849_v10  ;;  %v1263_v0 = vmul.f32 %v1210_v61, %v1138_v14  ;;  %v3214_v2 = vsel %vm893_vm3, %v899_v33, %v3197_v4  ;;  %v670_v10 = vadd.f32 %v2974_v54, %v669_v28 }
 0x1b2   : > { %v807_v34 = vadd.f32 %v791_v21, %v606_v19  ;;  %v902_v61 = vrot.slane %v466_v45, 2  ;;  %v607_v28 = vmul.f32 %v566_v36, %v3153_v58  ;;  %v1040_v58 = vadd.f32 %v3134_v56, %v3046_v1 }
 0x1b3   : > { %v967_v17 = vadd.f32 %v951_v47, %v806_v26  ;;  %2209 = vmatmul.msk.f32.gmra.mxu3 %vm490_vm1, %v2695_v35  ;;  %2289 = vmatmul.msk.f32.gmra.mxu2 %vm490_vm1, %v2695_v35  ;;  %v1037_v35 = vadd.f32 %v3134_v56, %v3015_v24  ;;  %v743_v26 = vrot.slane %v3207_v50, 1  ;;  %v742_v24 = vsel %vm732_vm2, %v739_v6, %v741_v23  ;;  %v672_v47 = vpop.f32.mrf.mxu0 }
 0x1b4   : > { %2278 = vmatmul.msk.f32.gmra.mxu1 %vm490_vm1, %v2767_v3  ;;  %v792_v6 = vmul.f32 %v742_v24, %v670_v10  ;;  %v673_v36 = vadd.f32 %v2974_v54, %v672_v47  ;;  %v469_v10 = vld [vmem:[%s2627_s19 + $0x40] sm:$0x3]  ;;  %v904_v1 = vrot.slane %v3207_v50, 2 }
 0x1b5   : > { %v1095_v62 = vadd.f32 %v1079_v30, %v967_v17  ;;  %v1080_v30 = vmul.f32 %v1037_v35, %v3207_v50  ;;  %v3244_v23 = vsel %vm732_vm2, %v743_v26, %v3228_v25 }
 0x1b6   : > { %v851_v8 = vpop.f32.mrf.mxu3  ;;  %v1140_v18 = vpop.f32.mrf.mxu2  ;;  %v808_v35 = vadd.f32 %v792_v6, %v607_v28  ;;  %v793_v28 = vmul.f32 %v3244_v23, %v673_v36  ;;  %v3280_v6 = vld [vmem:[%s2627_s19 + $0x48] sm:$0xff] }
 0x1b7   : > { %v3220_v12 = vadd.f32 %v1263_v0, %v1095_v62  ;;  %v852_v9 = vadd.f32 %v3147_v5, %v851_v8  ;;  %v1141_v33 = vadd.f32 %v3158_v27, %v1140_v18  ;;  %v1214_v0 = vrot.slane %v3239_v37, 1  ;;  %v3261_v26 = vpop.f32.mrf.mxu1 }
 0x1b8   : > { %v748_v36 = vrot.slane %v3280_v6, 1 }
 0x1b9   : > { %v952_v14 = vmul.f32 %v3214_v2, %v852_v9  ;;  %v1264_v19 = vmul.f32 %v1141_v33, %v3244_v23  ;;  %v569_v9 = vadd.f32 %v2969_v53, %v2898_v38  ;;  %v1215_v33 = vsel %vm732_vm2, %v3228_v25, %v1214_v0 }
 0x1ba   : > { %v1081_v38 = vmul.f32 %v1040_v58, %v3210_v51  ;;  %v1043_v0 = vadd.f32 %v3134_v56, %v3070_v32 }
 0x1bb   : > { %v968_v17 = vadd.f32 %v952_v14, %v807_v34  ;;  %2210 = vmatmul.msk.f32.gmra.mxu3 %vm490_vm1, %v2703_v39  ;;  %2290 = vmatmul.msk.f32.gmra.mxu2 %vm490_vm1, %v2703_v39  ;;  %v903_v39 = vsel %vm893_vm3, %v3197_v4, %v902_v61  ;;  %v3266_v14 = vrot.slane %v3210_v51, 2  ;;  %v675_v61 = vpop.f32.mrf.mxu0 }
 0x1bc   : > { %2279 = vmatmul.msk.f32.gmra.mxu1 %vm490_vm1, %v2779_v7 }
 0x1bd   : > { %v1096_v45 = vadd.f32 %v1080_v30, %v968_v17  ;;  %v746_v30 = vrot.slane %v469_v10, 1  ;;  %v608_v17 = vmul.f32 %v569_v9, %v3207_v50  ;;  %v676_v9 = vadd.f32 %v2974_v54, %v675_v61  ;;  %v3313_v61 = vld [vmem:[%s2627_s19 + $0x58] sm:$0x3] }
 0x1be   : > { %v854_v21 = vpop.f32.mrf.mxu3  ;;  %v1143_v62 = vpop.f32.mrf.mxu2 }
 0x1bf   : > { %v3254_v8 = vadd.f32 %v1264_v19, %v1096_v45  ;;  %v855_v18 = vadd.f32 %v3147_v5, %v854_v21  ;;  %v1144_v24 = vadd.f32 %v3158_v27, %v1143_v62  ;;  %v3283_v45 = vld [vmem:[%s2627_s19 + $0x50] sm:$0xff]  ;;  %v3287_v62 = vsel %vm893_vm3, %v904_v1, %v3266_v14 }
 0x1c0   : > { %v747_v1 = vsel %vm732_vm2, %v3228_v25, %v746_v30 }
 0x1c1   : > { %v953_v34 = vmul.f32 %v903_v39, %v855_v18  ;;  %v1265_v21 = vmul.f32 %v1215_v33, %v1144_v24  ;;  %v809_v24 = vadd.f32 %v793_v28, %v608_v17  ;;  %v794_v17 = vmul.f32 %v747_v1, %v676_v9 }
 0x1c2   : > { %v575_v1 = vadd.f32 %v2969_v53, %v2918_v41 }
 0x1c3   : > { %v969_v47 = vadd.f32 %v953_v34, %v808_v35  ;;  %2211 = vmatmul.msk.f32.gmra.mxu3 %vm490_vm1, %v2714_v44  ;;  %2291 = vmatmul.msk.f32.gmra.mxu2 %vm490_vm1, %v2714_v44  ;;  %v572_v35 = vadd.f32 %v2969_v53, %v2908_v40  ;;  %v3299_v34 = vrot.slane %v3283_v45, 1 }
 0x1c4   : > { %2280 = vmatmul.msk.f32.gmra.mxu1 %vm490_vm1, %v2791_v11  ;;  %v610_v41 = vmul.f32 %v575_v1, %v3280_v6 }
 0x1c5   : > { %v1097_v19 = vadd.f32 %v1081_v38, %v969_v47  ;;  %v907_v38 = vrot.slane %v469_v10, 2  ;;  %v1082_v47 = vmul.f32 %v1043_v0, %v3280_v6  ;;  %v609_v30 = vmul.f32 %v572_v35, %v3210_v51  ;;  %v678_v10 = vpop.f32.mrf.mxu0 }
 0x1c6   : > { %v857_v39 = vpop.f32.mrf.mxu3  ;;  %v1146_v44 = vpop.f32.mrf.mxu2  ;;  %v3318_v28 = vsel %vm732_vm2, %v748_v36, %v3299_v34  ;;  %v1046_v35 = vadd.f32 %v3134_v56, %v3102_v13 }
 0x1c7   : > { %v3291_v58 = vadd.f32 %v1265_v21, %v1097_v19  ;;  %v858_v18 = vadd.f32 %v3147_v5, %v857_v39  ;;  %v1147_v33 = vadd.f32 %v3158_v27, %v1146_v44  ;;  %v3306_v19 = vpop.f32.mrf.mxu1 }
 0x1c9   : > { %v954_v32 = vmul.f32 %v3287_v62, %v858_v18  ;;  %v1266_v39 = vmul.f32 %v1147_v33, %v3318_v28  ;;  %v1219_v18 = vrot.slane %v3313_v61, 1 }
 0x1cb   : > { %v970_v40 = vadd.f32 %v954_v32, %v809_v24  ;;  %2212 = vmatmul.msk.f32.gmra.mxu3 %vm490_vm1, %v2725_v49  ;;  %2292 = vmatmul.msk.f32.gmra.mxu2 %vm490_vm1, %v2725_v49  ;;  %v908_v49 = vsel %vm893_vm3, %v3266_v14, %v907_v38  ;;  %v810_v24 = vadd.f32 %v794_v17, %v609_v30  ;;  %v909_v38 = vrot.slane %v3280_v6, 2 }
 0x1cc   : > { %2281 = vmatmul.msk.f32.gmra.mxu1 %vm490_vm1, %v2803_v15  ;;  %v679_v32 = vadd.f32 %v2974_v54, %v678_v10  ;;  %v1220_v13 = vsel %vm732_vm2, %v3299_v34, %v1219_v18  ;;  %v1083_v30 = vmul.f32 %v1046_v35, %v3283_v45 }
 0x1cd   : > { %v1098_v21 = vadd.f32 %v1082_v47, %v970_v40  ;;  %v3337_v40 = vrot.slane %v3283_v45, 2 }
 0x1ce   : > { %v860_v44 = vpop.f32.mrf.mxu3  ;;  %v1149_v0 = vpop.f32.mrf.mxu2  ;;  %v795_v10 = vmul.f32 %v3318_v28, %v679_v32 }
 0x1cf   : > { %v3328_v9 = vadd.f32 %v1266_v39, %v1098_v21  ;;  %v861_v36 = vadd.f32 %v3147_v5, %v860_v44  ;;  %v1150_v47 = vadd.f32 %v3158_v27, %v1149_v0  ;;  %v472_v21 = vld [vmem:[%s2627_s19 + $0x58] sm:$0x3]  ;;  %v3351_v39 = vpop.f32.mrf.mxu1  ;;  %v3355_v35 = vsel %vm893_vm3, %v909_v38, %v3337_v40 }
 0x1d0   : > { %v751_v0 = vrot.slane %v472_v21, 1 }
 0x1d1   : > { %4001 = vst [vmem:[#allocation30_spill] sm:$0xff] %v3328_v9  ;;  %v955_v33 = vmul.f32 %v908_v49, %v861_v36  ;;  %v1267_v49 = vmul.f32 %v1220_v13, %v1150_v47  ;;  %v811_v47 = vadd.f32 %v795_v10, %v610_v41  ;;  %v682_v13 = vadd.f32 %v2974_v54, %v2936_v43  ;;  %v3380_v43 = vld [vmem:[%s2627_s19 + $0x70] sm:$0x3] }
 0x1d2   : > { %v912_v9 = vrot.slane %v472_v21, 2 }
 0x1d3   : > { %v971_v17 = vadd.f32 %v955_v33, %v810_v24  ;;  %2213 = vmatmul.msk.f32.gmra.mxu3 %vm490_vm1, %v2739_v55  ;;  %2293 = vmatmul.msk.f32.gmra.mxu2 %vm490_vm1, %v2739_v55  ;;  %v3358_v24 = vld [vmem:[%s2627_s19 + $0x60] sm:$0xff]  ;;  %v1049_v55 = vadd.f32 %v3134_v56, %v3136_v57  ;;  %v578_v57 = vadd.f32 %v2969_v53, %v2928_v42 }
 0x1d4   : > { %2282 = vmatmul.msk.f32.gmra.mxu1 %vm490_vm1, %v2818_v20  ;;  %v753_v33 = vrot.slane %v3358_v24, 1 }
 0x1d5   : > { %v1099_v44 = vadd.f32 %v1083_v30, %v971_v17  ;;  %v752_v17 = vsel %vm732_vm2, %v3299_v34, %v751_v0 }
 0x1d6   : > { %v863_v18 = vpop.f32.mrf.mxu3  ;;  %v1152_v36 = vpop.f32.mrf.mxu2  ;;  %v3384_v41 = vsel %vm732_vm2, %v753_v33, %v2962_v52  ;;  %v796_v21 = vmul.f32 %v752_v17, %v682_v13 }
 0x1d7   : > { %v3362_v1 = vadd.f32 %v1267_v49, %v1099_v44  ;;  %v864_v32 = vadd.f32 %v3147_v5, %v863_v18  ;;  %v1153_v30 = vadd.f32 %v3158_v27, %v1152_v36  ;;  %v1084_v44 = vmul.f32 %v1049_v55, %v3358_v24  ;;  %v3395_v33 = vpop.f32.mrf.mxu1 }
 0x1d8   : > { %v913_v18 = vsel %vm893_vm3, %v3337_v40, %v912_v9  ;;  %v611_v55 = vmul.f32 %v578_v57, %v3283_v45  ;;  %v3405_v57 = vrot.slane %v2952_v48, 2 }
 0x1d9   : > { %v956_v38 = vmul.f32 %v3355_v35, %v864_v32  ;;  %v1268_v10 = vmul.f32 %v1153_v30, %v3384_v41  ;;  %v1052_v32 = vadd.f32 %v3134_v56, %v3181_v16  ;;  %v685_v30 = vadd.f32 %v2974_v54, %v2946_v46  ;;  %v4003_v46 = vld [vmem:[#allocation5_spill] sm:$0xff] }
 0x1db   : > { %v972_v49 = vadd.f32 %v956_v38, %v811_v47  ;;  %2214 = vmatmul.msk.f32.gmra.mxu3 %vm490_vm1, %v2747_v59  ;;  %2294 = vmatmul.msk.f32.gmra.mxu2 %vm490_vm1, %v2747_v59  ;;  %v1224_v59 = vrot.slane %v3380_v43, 1  ;;  %v812_v38 = vadd.f32 %v796_v21, %v611_v55  ;;  %v797_v54 = vmul.f32 %v3384_v41, %v685_v30 }
 0x1dc   : > { %2283 = vmatmul.msk.f32.gmra.mxu1 %vm490_vm1, %v2836_v29 }
 0x1dd   : > { %v1100_v42 = vadd.f32 %v1084_v44, %v972_v49  ;;  %v3964_v44 = vrot.slane %v3358_v24, 2  ;;  %v1225_v16 = vsel %vm732_vm2, %v2962_v52, %v1224_v59  ;;  %v4002_v49 = vld [vmem:[#allocation6_spill] sm:$0xff] }
 0x1de   : > { %v866_v0 = vpop.f32.mrf.mxu3  ;;  %v1155_v36 = vpop.f32.mrf.mxu2 }
 0x1df   : > { %v3397_v47 = vadd.f32 %v1268_v10, %v1100_v42  ;;  %v867_v13 = vadd.f32 %v3147_v5, %v866_v0  ;;  %v1156_v9 = vadd.f32 %v3158_v27, %v1155_v36  ;;  %v581_v42 = vadd.f32 %v2969_v53, %v4002_v49  ;;  %v4006_v49 = vld [vmem:[#allocation8_spill] sm:$0xff] }
 0x1e0   : > { %v1085_v10 = vmul.f32 %v1052_v32, %v2952_v48  ;;  %v3423_v48 = vsel %vm893_vm3, %v3964_v44, %v3405_v57 }
 0x1e1   : > { %v957_v17 = vmul.f32 %v913_v18, %v867_v13  ;;  %v1269_v18 = vmul.f32 %v1225_v16, %v1156_v9  ;;  %v612_v59 = vmul.f32 %v581_v42, %v3358_v24  ;;  %v4005_v9 = vld [vmem:[#allocation7_spill] sm:$0xff] }
 0x1e2   : > { %v917_v16 = vrot.slane %v4005_v9, 2  ;;  %v1856_v9 = vrot.slane %v4006_v49, 2 }
 0x1e3   : > { %v973_v21 = vadd.f32 %v957_v17, %v812_v38  ;;  %2215 = vmatmul.msk.f32.gmra.mxu3 %vm490_vm1, %v2757_v63  ;;  %2295 = vmatmul.msk.f32.gmra.mxu2 %vm490_vm1, %v2757_v63  ;;  %v1055_v63 = vadd.f32 %v3134_v56, %v3218_v31  ;;  %v813_v13 = vadd.f32 %v797_v54, %v612_v59  ;;  %v3431_v38 = vpop.f32.mrf.mxu1  ;;  %v3442_v31 = vld [vmem:[%s2627_s19 + $0x88] sm:$0x3]  ;;  %v4008_v54 = vld [vmem:[#allocation12_spill] sm:$0xff] }
 0x1e4   : > { %2284 = vmatmul.msk.f32.gmra.mxu1 %vm490_vm1, %v4003_v46  ;;  %4007 = vst [vmem:[#allocation5_spill] sm:$0xff] %v3442_v31  ;;  %v1229_v59 = vrot.slane %v3442_v31, 1 }
 0x1e5   : > { %v1101_v0 = vadd.f32 %v1085_v10, %v973_v21  ;;  %v1086_v10 = vmul.f32 %v1055_v63, %v4006_v49  ;;  %v1058_v63 = vadd.f32 %v3134_v56, %v3261_v26  ;;  %v4013_v26 = vld [vmem:[#allocation11_spill] sm:$0xff] }
 0x1e6   : > { %v869_v36 = vpop.f32.mrf.mxu3  ;;  %v1158_v53 = vpop.f32.mrf.mxu2 }
 0x1e7   : > { %v3428_v55 = vadd.f32 %v1269_v18, %v1101_v0  ;;  %v870_v32 = vadd.f32 %v3147_v5, %v869_v36  ;;  %v1159_v17 = vadd.f32 %v3158_v27, %v1158_v53  ;;  %v918_v36 = vsel %vm893_vm3, %v3405_v57, %v917_v16 }
 0x1e9   : > { %4004 = vst [vmem:[#allocation6_spill] sm:$0xff] %v3428_v55  ;;  %v958_v30 = vmul.f32 %v3423_v48, %v870_v32  ;;  %v1270_v0 = vmul.f32 %v1159_v17, %v4008_v54  ;;  %v4010_v17 = vld [vmem:[#allocation9_spill] sm:$0xff] }
 0x1ea   : > { %v1087_v44 = vmul.f32 %v1058_v63, %v4010_v17 }
 0x1eb   : > { %v974_v21 = vadd.f32 %v958_v30, %v813_v13  ;;  %2216 = vmatmul.msk.f32.gmra.mxu3 %vm490_vm1, %v2767_v3  ;;  %2296 = vmatmul.msk.f32.gmra.mxu2 %vm490_vm1, %v2767_v3  ;;  %v3461_v31 = vpop.f32.mrf.mxu1 }
 0x1ed   : > { %v1102_v42 = vadd.f32 %v1086_v10, %v974_v21  ;;  %v3456_v10 = vrot.slane %v4010_v17, 2  ;;  %v4012_v21 = vld [vmem:[#allocation10_spill] sm:$0xff]  ;;  %v4015_v17 = vld [vmem:[#allocation13_spill] sm:$0xff] }
 0x1ee   : > { %v872_v18 = vpop.f32.mrf.mxu3  ;;  %v1161_v53 = vpop.f32.mrf.mxu2  ;;  %v1230_v16 = vsel %vm732_vm2, %v4012_v21, %v1229_v59  ;;  %v1061_v59 = vadd.f32 %v3134_v56, %v3306_v19  ;;  %v3487_v19 = vld [vmem:[%s2627_s19 + $0xa0] sm:$0x3] }
 0x1ef   : > { %v3450_v32 = vadd.f32 %v1270_v0, %v1102_v42  ;;  %v873_v13 = vadd.f32 %v3147_v5, %v872_v18  ;;  %v1162_v30 = vadd.f32 %v3158_v27, %v1161_v53  ;;  %4011 = vst [vmem:[#allocation8_spill] sm:$0xff] %v3456_v10 }
 0x1f0   : > { %4018 = vst [vmem:[#allocation9_spill] sm:$0xff] %v3487_v19 }
 0x1f1   : > { %4009 = vst [vmem:[#allocation7_spill] sm:$0xff] %v3450_v32  ;;  %v959_v3 = vmul.f32 %v918_v36, %v873_v13  ;;  %v1271_v0 = vmul.f32 %v1230_v16, %v1162_v30  ;;  %v3470_v36 = vsel %vm893_vm3, %v1856_v9, %v3456_v10  ;;  %v4016_v30 = vld [vmem:[#allocation15_spill] sm:$0xff] }
 0x1f2   : > { %v1088_v16 = vmul.f32 %v1061_v59, %v4016_v30 }
 0x1f3   : > { %v975_v42 = vadd.f32 %v959_v3, %v4013_v26  ;;  %2217 = vmatmul.msk.f32.gmra.mxu3 %vm490_vm1, %v2779_v7  ;;  %2297 = vmatmul.msk.f32.gmra.mxu2 %vm490_vm1, %v2779_v7  ;;  %v4017_v26 = vld [vmem:[#allocation14_spill] sm:$0xff]  ;;  %v3489_v9 = vpop.f32.mrf.mxu1 }
 0x1f5   : > { %v1103_v49 = vadd.f32 %v1087_v44, %v975_v42  ;;  %v922_v44 = vrot.slane %v4015_v17, 2  ;;  %v1064_v17 = vadd.f32 %v3134_v56, %v3351_v39  ;;  %v3513_v39 = vpop.f32.mrf.mxu0 }
 0x1f6   : > { %v875_v18 = vpop.f32.mrf.mxu3  ;;  %v1164_v53 = vpop.f32.mrf.mxu2 }
 0x1f7   : > { %v3474_v63 = vadd.f32 %v1271_v0, %v1103_v49  ;;  %v876_v13 = vadd.f32 %v3147_v5, %v875_v18  ;;  %v1165_v7 = vadd.f32 %v3158_v27, %v1164_v53  ;;  %v4019_v0 = vld [vmem:[#allocation19_spill] sm:$0xff] }
 0x1f9   : > { %4014 = vst [vmem:[#allocation12_spill] sm:$0xff] %v3474_v63  ;;  %v960_v3 = vmul.f32 %v3470_v36, %v876_v13  ;;  %v1272_v18 = vmul.f32 %v1165_v7, %v4019_v0  ;;  %v923_v13 = vsel %vm893_vm3, %v3456_v10, %v922_v44  ;;  %v4021_v7 = vld [vmem:[#allocation16_spill] sm:$0xff]  ;;  %v4023_v0 = vld [vmem:[#allocation17_spill] sm:$0xff]  ;;  %v4024_v10 = vld [vmem:[#allocation18_spill] sm:$0xff] }
 0x1fb   : > { %v976_v42 = vadd.f32 %v960_v3, %v4017_v26  ;;  %2218 = vmatmul.msk.f32.gmra.mxu3 %vm490_vm1, %v2791_v11  ;;  %2298 = vmatmul.msk.f32.gmra.mxu2 %vm490_vm1, %v2791_v11  ;;  %v1234_v3 = vrot.slane %v3487_v19, 1  ;;  %v1089_v19 = vmul.f32 %v1064_v17, %v4021_v7  ;;  %v4027_v17 = vld [vmem:[#allocation22_spill] sm:$0xff] }
 0x1fd   : > { %v1104_v49 = vadd.f32 %v1088_v16, %v976_v42  ;;  %v1861_v16 = vrot.slane %v4016_v30, 2  ;;  %v3503_v42 = vrot.slane %v4021_v7, 2  ;;  %v1235_v44 = vsel %vm732_vm2, %v4023_v0, %v1234_v3 }
 0x1fe   : > { %v878_v53 = vpop.f32.mrf.mxu3  ;;  %v1167_v59 = vpop.f32.mrf.mxu2 }
 0x1ff   : > { %v3497_v26 = vadd.f32 %v1272_v18, %v1104_v49  ;;  %v879_v11 = vadd.f32 %v3147_v5, %v878_v53  ;;  %v1168_v32 = vadd.f32 %v3158_v27, %v1167_v59  ;;  %4022 = vst [vmem:[#allocation11_spill] sm:$0xff] %v3503_v42  ;;  %v3517_v53 = vsel %vm893_vm3, %v1861_v16, %v3503_v42  ;;  %v4028_v16 = vld [vmem:[#allocation21_spill] sm:$0xff] }
 0x201   : > { %4020 = vst [vmem:[#allocation10_spill] sm:$0xff] %v3497_v26  ;;  %v961_v63 = vmul.f32 %v923_v13, %v879_v11  ;;  %v1273_v30 = vmul.f32 %v1235_v44, %v1168_v32  ;;  %v4026_v32 = vld [vmem:[#allocation20_spill] sm:$0xff] }
 0x203   : > { %v977_v55 = vadd.f32 %v961_v63, %v4024_v10  ;;  %2219 = vmatmul.msk.f32.gmra.mxu3 %vm490_vm1, %v2803_v15  ;;  %2299 = vmatmul.msk.f32.gmra.mxu2 %vm490_vm1, %v2803_v15  ;;  %v1067_v10 = vadd.f32 %v3134_v56, %v3395_v33  ;;  %v3521_v63 = vpop.f32.mrf.mxu1  ;;  %v3536_v33 = vld [vmem:[%s2627_s19 + $0xb8] sm:$0x3] }
 0x204   : > { %4029 = vst [vmem:[#allocation15_spill] sm:$0xff] %v3536_v33 }
 0x205   : > { %v1105_v49 = vadd.f32 %v1089_v19, %v977_v55  ;;  %v927_v19 = vrot.slane %v4026_v32, 2  ;;  %v1090_v11 = vmul.f32 %v1067_v10, %v4027_v17  ;;  %v1239_v10 = vrot.slane %v3536_v33, 1  ;;  %v4033_v33 = vld [vmem:[#allocation24_spill] sm:$0xff] }
 0x206   : > { %v881_v18 = vpop.f32.mrf.mxu3  ;;  %v1170_v13 = vpop.f32.mrf.mxu2  ;;  %v1070_v32 = vadd.f32 %v3134_v56, %v3431_v38  ;;  %v4034_v38 = vld [vmem:[#allocation25_spill] sm:$0xff] }
 0x207   : > { %v3523_v59 = vadd.f32 %v1273_v30, %v1105_v49  ;;  %v882_v15 = vadd.f32 %v3147_v5, %v881_v18  ;;  %v1171_v55 = vadd.f32 %v3158_v27, %v1170_v13  ;;  %v4030_v49 = vld [vmem:[#allocation26_spill] sm:$0xff]  ;;  %v928_v13 = vsel %vm893_vm3, %v3503_v42, %v927_v19 }
 0x208   : > { %v1866_v19 = vrot.slane %v4027_v17, 2  ;;  %v1240_v26 = vsel %vm732_vm2, %v4033_v33, %v1239_v10 }
 0x209   : > { %4025 = vst [vmem:[#allocation13_spill] sm:$0xff] %v3523_v59  ;;  %v962_v3 = vmul.f32 %v3517_v53, %v882_v15  ;;  %v1274_v30 = vmul.f32 %v1171_v55, %v4030_v49  ;;  %v4032_v59 = vld [vmem:[#allocation23_spill] sm:$0xff] }
 0x20a   : > { %v3554_v49 = vrot.slane %v4032_v59, 2  ;;  %v1091_v42 = vmul.f32 %v1070_v32, %v4032_v59 }
 0x20b   : > { %v978_v7 = vadd.f32 %v962_v3, %v4028_v16  ;;  %2220 = vmatmul.msk.f32.gmra.mxu3 %vm490_vm1, %v2818_v20  ;;  %2300 = vmatmul.msk.f32.gmra.mxu2 %vm490_vm1, %v2818_v20  ;;  %v3542_v3 = vpop.f32.mrf.mxu0  ;;  %v3549_v16 = vpop.f32.mrf.mxu1 }
 0x20c   : > { %v3576_v32 = vsel %vm893_vm3, %v1866_v19, %v3554_v49  ;;  %v4037_v19 = vld [vmem:[#allocation27_spill] sm:$0xff] }
 0x20d   : > { %v1106_v44 = vadd.f32 %v1090_v11, %v978_v7 }
 0x20e   : > { %v884_v18 = vpop.f32.mrf.mxu3  ;;  %v1173_v15 = vpop.f32.mrf.mxu2 }
 0x20f   : > { %v3546_v20 = vadd.f32 %v1274_v30, %v1106_v44  ;;  %v885_v11 = vadd.f32 %v3147_v5, %v884_v18  ;;  %v1174_v7 = vadd.f32 %v3158_v27, %v1173_v15  ;;  %v3565_v30 = vld [vmem:[%s2627_s19 + $0xc0] sm:$0xff]  ;;  %v3568_v18 = vld [vmem:[%s2627_s19 + $0xc8] sm:$0xff] }
 0x210   : > { %4035 = vst [vmem:[#allocation16_spill] sm:$0xff] %v3565_v30  ;;  %v1711_v15 = vrot.slane %v3565_v30, 1  ;;  %v3572_v10 = vrot.slane %v3568_v18, 1 }
 0x211   : > { %4031 = vst [vmem:[#allocation14_spill] sm:$0xff] %v3546_v20  ;;  %v963_v55 = vmul.f32 %v928_v13, %v885_v11  ;;  %v1275_v13 = vmul.f32 %v1240_v26, %v1174_v7  ;;  %v932_v20 = vrot.slane %v4037_v19, 2 }
 0x213   : > { %v979_v44 = vadd.f32 %v963_v55, %v4034_v38  ;;  %2221 = vmatmul.msk.f32.gmra.mxu3 %vm490_vm1, %v2836_v29  ;;  %2301 = vmatmul.msk.f32.gmra.mxu2 %vm490_vm1, %v2836_v29  ;;  %v1073_v29 = vadd.f32 %v3134_v56, %v3461_v31  ;;  %v3583_v26 = vpop.f32.mrf.mxu0  ;;  %v3593_v0 = vpop.f32.mrf.mxu1  ;;  %v4038_v31 = vld [vmem:[#allocation28_spill] sm:$0xff] }
 0x215   : > { %v1107_v17 = vadd.f32 %v1091_v42, %v979_v44  ;;  %v3589_v44 = vsel %vm732_vm2, %v1711_v15, %v3572_v10  ;;  %v1092_v33 = vmul.f32 %v3565_v30, %v1073_v29 }
 0x216   : > { %v887_v59 = vpop.f32.mrf.mxu3  ;;  %v1176_v11 = vpop.f32.mrf.mxu2 }
 0x217   : > { %v3580_v55 = vadd.f32 %v1275_v13, %v1107_v17  ;;  %v888_v42 = vadd.f32 %v3147_v5, %v887_v59  ;;  %v1177_v38 = vadd.f32 %v3158_v27, %v1176_v11  ;;  %v3601_v13 = vld [vmem:[%s2627_s19 + $0xd0] sm:$0x3] }
 0x218   : > { %v1244_v19 = vrot.slane %v3601_v13, 1 }
 0x219   : > { %4036 = vst [vmem:[#allocation18_spill] sm:$0xff] %v3580_v55  ;;  %v964_v7 = vmul.f32 %v3576_v32, %v888_v42  ;;  %v1276_v15 = vmul.f32 %v3589_v44, %v1177_v38  ;;  %v933_v42 = vsel %vm893_vm3, %v3554_v49, %v932_v20  ;;  %v3618_v20 = vld [vmem:[%s3932_s5 + $0x6] ss:$0 sm:$0xff] }
 0x21b   : > { %v980_v17 = vadd.f32 %v964_v7, %v4038_v31  ;;  %2222 = vmatmul.msk.f32.gmra.mxu3 %vm490_vm1, %v4003_v46  ;;  %2302 = vmatmul.msk.f32.gmra.mxu2 %vm490_vm1, %v4003_v46  ;;  %v1076_v7 = vadd.f32 %v3134_v56, %v3489_v9  ;;  %v3620_v38 = vpop.f32.mrf.mxu0  ;;  %v4040_v9 = vld [vmem:[#allocation29_spill] sm:$0xff] }
 0x21d   : > { %v1108_v59 = vadd.f32 %v1092_v33, %v980_v17  ;;  %v1245_v33 = vsel %vm732_vm2, %v3572_v10, %v1244_v19  ;;  %v1093_v56 = vmul.f32 %v3568_v18, %v1076_v7 }
 0x21e   : > { %v890_v11 = vpop.f32.mrf.mxu3  ;;  %v1179_v29 = vpop.f32.mrf.mxu2 }
 0x21f   : > { %v3609_v31 = vadd.f32 %v1276_v15, %v1108_v59  ;;  %v891_v55 = vadd.f32 %v3147_v5, %v890_v11  ;;  %v1180_v30 = vadd.f32 %v3158_v27, %v1179_v29  ;;  %v3627_v5 = vld [vmem:[%s3932_s5 + $0x5] ss:$0 sm:$0xff]  ;;  %v3632_v27 = vld [vmem:[%s3932_s5 + $0x7] ss:$0 sm:$0xff]  ;;  %v1506_v29 = vadd.f32 %v3618_v20, %v3513_v39  ;;  %v2227_v39 = vld [vmem:[%s2627_s19 + $0x40] sm:$0x3] }
 0x221   : > { %4039 = vst [vmem:[#allocation20_spill] sm:$0xff] %v3609_v31  ;;  %v965_v46 = vmul.f32 %v933_v42, %v891_v55  ;;  %v3634_v55 = vpop.f32.mrf.mxu1  ;;  %v1277_v15 = vmul.f32 %v1245_v33, %v1180_v30  ;;  %v1369_v33 = vrot.slane %v3175_v22, 2 }
 0x223   : > { %v981_v17 = vadd.f32 %v965_v46, %v4040_v9  ;;  %v3644_v46 = vld [vmem:[%s3932_s5 + $0x8] ss:$0 sm:$0xff]  ;;  %v1610_v9 = vadd.f32 %v3632_v27, %v3521_v63  ;;  %v1684_v63 = vrot.slane %v2227_v39, 1 }
 0x225   : > { %v1109_v59 = vadd.f32 %v1093_v56, %v981_v17  ;;  %v1553_v56 = vmul.f32 %v1506_v29, %v3207_v50  ;;  %v1509_v50 = vadd.f32 %v3618_v20, %v3542_v3 }
 0x226   : > { %v1318_v11 = vpop.f32.mrf.mxu3  ;;  %v1793_v42 = vpop.f32.mrf.mxu2 }
 0x227   : > { %v3638_v19 = vadd.f32 %v1277_v15, %v1109_v59  ;;  %v1319_v7 = vadd.f32 %v3627_v5, %v1318_v11  ;;  %v1794_v59 = vadd.f32 %v3644_v46, %v1793_v42  ;;  %v3655_v15 = vpop.f32.mrf.mxu0  ;;  %v1737_v11 = vmul.f32 %v1610_v9, %v3244_v23 }
 0x228   : > { %v1844_v23 = vrot.slane %v2227_v39, 2  ;;  %v1613_v9 = vadd.f32 %v3632_v27, %v3549_v16 }
 0x229   : > { %4041 = vst [vmem:[#allocation22_spill] sm:$0xff] %v3638_v19  ;;  %v1422_v30 = vmul.f32 %v1319_v7, %v3214_v2  ;;  %v1370_v2 = vsel %vm893_vm3, %v3197_v4, %v1369_v33  ;;  %v3664_v29 = vpop.f32.mrf.mxu1  ;;  %v1897_v42 = vmul.f32 %v1794_v59, %v3287_v62  ;;  %v1685_v4 = vsel %vm732_vm2, %v3228_v25, %v1684_v63 }
 0x22a   : > { %v1554_v33 = vmul.f32 %v1509_v50, %v3210_v51  ;;  %v1738_v16 = vmul.f32 %v1685_v4, %v1613_v9  ;;  %v1512_v51 = vadd.f32 %v3618_v20, %v3583_v26 }
 0x22b   : > { %v1438_v17 = vadd.f32 %v1422_v30, %v3187_v60 }
 0x22d   : > { %v1569_v19 = vadd.f32 %v1553_v56, %v1438_v17 }
 0x22e   : > { %v1321_v31 = vpop.f32.mrf.mxu3  ;;  %v1796_v22 = vpop.f32.mrf.mxu2 }
 0x22f   : > { %v1753_v60 = vadd.f32 %v1737_v11, %v1569_v19  ;;  %v1322_v7 = vadd.f32 %v3627_v5, %v1321_v31  ;;  %v1797_v31 = vadd.f32 %v3644_v46, %v1796_v22  ;;  %v1845_v19 = vsel %vm893_vm3, %v3266_v14, %v1844_v23  ;;  %v1520_v59 = vpop.f32.mrf.mxu0  ;;  %v2230_v23 = vld [vmem:[%s2627_s19 + $0x58] sm:$0x3] }
 0x230   : > { %v1689_v4 = vrot.slane %v2230_v23, 1 }
 0x231   : > { %v1913_v30 = vadd.f32 %v1897_v42, %v1753_v60  ;;  %v1423_v56 = vmul.f32 %v1370_v2, %v1322_v7  ;;  %v1898_v63 = vmul.f32 %v1845_v19, %v1797_v31  ;;  %v1624_v22 = vpop.f32.mrf.mxu1  ;;  %v1374_v42 = vrot.slane %v3239_v37, 2 }
 0x232   : > { %v1555_v7 = vmul.f32 %v1512_v51, %v3280_v6  ;;  %v1515_v37 = vadd.f32 %v3618_v20, %v3620_v38  ;;  %v1849_v31 = vrot.slane %v2230_v23, 2  ;;  %v1379_v23 = vrot.slane %v3313_v61, 2 }
 0x233   : > { %1929 = vst.msk [vmem:[%s3673_s30] sm:$0xff] %vm289_vm0, %v1913_v30  ;;  %v1439_v3 = vadd.f32 %v1423_v56, %v3220_v12  ;;  %v1616_v12 = vadd.f32 %v3632_v27, %v3593_v0 }
 0x234   : > { %v1380_v61 = vsel %vm893_vm3, %v3337_v40, %v1379_v23  ;;  %v2399_v23 = vld [vmem:[%s2627_s19 + $0x78] sm:$0xff] }
 0x235   : > { %v1570_v39 = vadd.f32 %v1554_v33, %v1439_v3  ;;  %v1739_v30 = vmul.f32 %v1616_v12, %v3318_v28  ;;  %v1619_v28 = vadd.f32 %v3632_v27, %v3634_v55 }
 0x236   : > { %v1324_v17 = vpop.f32.mrf.mxu3  ;;  %v1799_v25 = vpop.f32.mrf.mxu2 }
 0x237   : > { %v1754_v11 = vadd.f32 %v1738_v16, %v1570_v39  ;;  %v1325_v2 = vadd.f32 %v3627_v5, %v1324_v17  ;;  %v1800_v9 = vadd.f32 %v3644_v46, %v1799_v25  ;;  %v1523_v19 = vpop.f32.mrf.mxu0  ;;  %v1690_v17 = vsel %vm732_vm2, %v3299_v34, %v1689_v4 }
 0x238   : > { %v1740_v55 = vmul.f32 %v1690_v17, %v1619_v28  ;;  %v1518_v34 = vadd.f32 %v3618_v20, %v3655_v15 }
 0x239   : > { %v1914_v50 = vadd.f32 %v1898_v63, %v1754_v11  ;;  %v1424_v60 = vmul.f32 %v1325_v2, %v3287_v62  ;;  %v1375_v62 = vsel %vm893_vm3, %v3266_v14, %v1374_v42  ;;  %v1899_v3 = vmul.f32 %v1800_v9, %v3355_v35  ;;  %v1627_v25 = vpop.f32.mrf.mxu1 }
 0x23a   : > { %v1556_v14 = vmul.f32 %v1515_v37, %v3283_v45  ;;  %v1850_v11 = vsel %vm893_vm3, %v3337_v40, %v1849_v31 }
 0x23b   : > { %1930 = vst.msk [vmem:[%s3673_s30 + $0x8] sm:$0xff] %vm289_vm0, %v1914_v50  ;;  %v1440_v26 = vadd.f32 %v1424_v60, %v3254_v8 }
 0x23d   : > { %v1571_v56 = vadd.f32 %v1555_v7, %v1440_v26  ;;  %v1557_v26 = vmul.f32 %v1518_v34, %v3358_v24  ;;  %v1524_v34 = vadd.f32 %v3618_v20, %v1523_v19 }
 0x23e   : > { %v1327_v0 = vpop.f32.mrf.mxu3  ;;  %v1802_v33 = vpop.f32.mrf.mxu2 }
 0x23f   : > { %v1755_v6 = vadd.f32 %v1739_v30, %v1571_v56  ;;  %v1328_v8 = vadd.f32 %v3627_v5, %v1327_v0  ;;  %v1803_v51 = vadd.f32 %v3644_v46, %v1802_v33  ;;  %v1526_v9 = vpop.f32.mrf.mxu0  ;;  %v2233_v30 = vld [vmem:[%s2627_s19 + $0x70] sm:$0x3]  ;;  %v4042_v56 = vld [vmem:[#allocation30_spill] sm:$0xff] }
 0x240   : > { %v1694_v33 = vrot.slane %v2233_v30, 1  ;;  %v1854_v28 = vrot.slane %v2233_v30, 2  ;;  %v2236_v30 = vld [vmem:[%s2627_s19 + $0x88] sm:$0x3] }
 0x241   : > { %v1915_v16 = vadd.f32 %v1899_v3, %v1755_v6  ;;  %v1425_v39 = vmul.f32 %v1375_v62, %v1328_v8  ;;  %v1900_v50 = vmul.f32 %v1850_v11, %v1803_v51  ;;  %v1630_v62 = vpop.f32.mrf.mxu1  ;;  %v1521_v6 = vadd.f32 %v3618_v20, %v1520_v59 }
 0x242   : > { %v1695_v17 = vsel %vm732_vm2, %v2962_v52, %v1694_v33  ;;  %v4043_v52 = vrot.slane %v3358_v24, 2 }
 0x243   : > { %1931 = vst.msk [vmem:[%s3673_s30 + $0x10] sm:$0xff] %vm289_vm0, %v1915_v16  ;;  %v1441_v38 = vadd.f32 %v1425_v39, %v3291_v58  ;;  %v1622_v58 = vadd.f32 %v3632_v27, %v3664_v29 }
 0x245   : > { %v1572_v63 = vadd.f32 %v1556_v14, %v1441_v38  ;;  %v1741_v0 = vmul.f32 %v1622_v58, %v3384_v41  ;;  %v1625_v41 = vadd.f32 %v3632_v27, %v1624_v22  ;;  %v2398_v14 = vld [vmem:[%s2627_s19 + $0x68] sm:$0xff] }
 0x246   : > { %v1330_v2 = vpop.f32.mrf.mxu3  ;;  %v1805_v12 = vpop.f32.mrf.mxu2  ;;  %v1382_v38 = vrot.slane %v2398_v14, 2  ;;  %v1558_v51 = vmul.f32 %v2398_v14, %v1521_v6  ;;  %v1631_v6 = vadd.f32 %v3632_v27, %v1630_v62 }
 0x247   : > { %v1756_v45 = vadd.f32 %v1740_v55, %v1572_v63  ;;  %v1331_v60 = vadd.f32 %v3627_v5, %v1330_v2  ;;  %v1806_v4 = vadd.f32 %v3644_v46, %v1805_v12  ;;  %v1529_v11 = vpop.f32.mrf.mxu0  ;;  %v1742_v22 = vmul.f32 %v1695_v17, %v1625_v41  ;;  %v4045_v17 = vld [vmem:[#allocation8_spill] sm:$0xff] }
 0x248   : > { %v1383_v2 = vsel %vm893_vm3, %v4043_v52, %v1382_v38 }
 0x249   : > { %v1916_v42 = vadd.f32 %v1900_v50, %v1756_v45  ;;  %v1426_v7 = vmul.f32 %v1331_v60, %v3355_v35  ;;  %v1901_v8 = vmul.f32 %v1806_v4, %v3423_v48  ;;  %v1855_v48 = vsel %vm893_vm3, %v3405_v57, %v1854_v28  ;;  %v2400_v28 = vld [vmem:[%s2627_s19 + $0x80] sm:$0xff] }
 0x24a   : > { %v1628_v57 = vadd.f32 %v3632_v27, %v1627_v25  ;;  %v1699_v4 = vrot.slane %v2236_v30, 1 }
 0x24b   : > { %1932 = vst.msk [vmem:[%s3673_s30 + $0x18] sm:$0xff] %vm289_vm0, %v1916_v42  ;;  %v1442_v15 = vadd.f32 %v1426_v7, %v4042_v56  ;;  %v1384_v7 = vrot.slane %v3380_v43, 2  ;;  %v1527_v43 = vadd.f32 %v3618_v20, %v1526_v9  ;;  %v4044_v9 = vld [vmem:[#allocation6_spill] sm:$0xff] }
 0x24c   : > { %v1743_v56 = vmul.f32 %v1628_v57, %v4008_v54 }
 0x24d   : > { %v1573_v29 = vadd.f32 %v1557_v26, %v1442_v15  ;;  %v1559_v26 = vmul.f32 %v2399_v23, %v1524_v34  ;;  %v1385_v25 = vsel %vm893_vm3, %v1382_v38, %v1384_v7  ;;  %v1560_v41 = vmul.f32 %v2400_v28, %v1527_v43  ;;  %v4048_v7 = vld [vmem:[#allocation19_spill] sm:$0xff] }
 0x24e   : > { %v1333_v35 = vpop.f32.mrf.mxu3  ;;  %v1808_v37 = vpop.f32.mrf.mxu2 }
 0x24f   : > { %v1757_v3 = vadd.f32 %v1741_v0, %v1573_v29  ;;  %v1334_v31 = vadd.f32 %v3627_v5, %v1333_v35  ;;  %v1809_v59 = vadd.f32 %v3644_v46, %v1808_v37  ;;  %v1532_v33 = vpop.f32.mrf.mxu0  ;;  %v1859_v37 = vrot.slane %v2236_v30, 2 }
 0x251   : > { %v1917_v16 = vadd.f32 %v1901_v8, %v1757_v3  ;;  %v1427_v39 = vmul.f32 %v1380_v61, %v1334_v31  ;;  %v1902_v50 = vmul.f32 %v1855_v48, %v1809_v59  ;;  %v1700_v31 = vsel %vm732_vm2, %v4012_v21, %v1699_v4 }
 0x252   : > { %v1860_v14 = vsel %vm893_vm3, %v4045_v17, %v1859_v37  ;;  %v1744_v62 = vmul.f32 %v1700_v31, %v1631_v6  ;;  %v1530_v21 = vadd.f32 %v3618_v20, %v1529_v11  ;;  %v4051_v31 = vld [vmem:[#allocation11_spill] sm:$0xff] }
 0x253   : > { %1933 = vst.msk [vmem:[%s3673_s30 + $0x20] sm:$0xff] %vm289_vm0, %v1917_v16  ;;  %v1443_v40 = vadd.f32 %v1427_v39, %v3362_v1  ;;  %v1633_v1 = vpop.f32.mrf.mxu1 }
 0x255   : > { %v1574_v55 = vadd.f32 %v1558_v51, %v1443_v40 }
 0x256   : > { %v1336_v63 = vpop.f32.mrf.mxu3  ;;  %v1811_v12 = vpop.f32.mrf.mxu2 }
 0x257   : > { %v1758_v45 = vadd.f32 %v1742_v22, %v1574_v55  ;;  %v1337_v60 = vadd.f32 %v3627_v5, %v1336_v63  ;;  %v1812_v19 = vadd.f32 %v3644_v46, %v1811_v12  ;;  %v1535_v55 = vpop.f32.mrf.mxu0  ;;  %v1634_v63 = vadd.f32 %v3632_v27, %v1633_v1  ;;  %v4046_v12 = vld [vmem:[#allocation5_spill] sm:$0xff] }
 0x258   : > { %v1389_v34 = vrot.slane %v4046_v12, 2 }
 0x259   : > { %v1918_v58 = vadd.f32 %v1902_v50, %v1758_v45  ;;  %v1428_v42 = vmul.f32 %v1383_v2, %v1337_v60  ;;  %v1903_v61 = vmul.f32 %v1812_v19, %v3470_v36  ;;  %v2401_v45 = vld [vmem:[%s2627_s19 + $0x90] sm:$0xff]  ;;  %v2239_v60 = vld [vmem:[%s2627_s19 + $0xa0] sm:$0x3]  ;;  %v1745_v23 = vmul.f32 %v1634_v63, %v4048_v7 }
 0x25a   : > { %v1561_v50 = vmul.f32 %v2401_v45, %v1530_v21  ;;  %v1704_v1 = vrot.slane %v2239_v60, 1  ;;  %v1533_v19 = vadd.f32 %v3618_v20, %v1532_v33  ;;  %v4054_v45 = vld [vmem:[#allocation26_spill] sm:$0xff] }
 0x25b   : > { %1934 = vst.msk [vmem:[%s3673_s30 + $0x28] sm:$0xff] %vm289_vm0, %v1918_v58  ;;  %v1444_v24 = vadd.f32 %v1428_v42, %v3397_v47  ;;  %v1636_v54 = vpop.f32.mrf.mxu1  ;;  %v4047_v58 = vld [vmem:[#allocation7_spill] sm:$0xff] }
 0x25d   : > { %v1575_v15 = vadd.f32 %v1559_v26, %v1444_v24 }
 0x25e   : > { %v1339_v0 = vpop.f32.mrf.mxu3  ;;  %v1814_v29 = vpop.f32.mrf.mxu2 }
 0x25f   : > { %v1759_v35 = vadd.f32 %v1743_v56, %v1575_v15  ;;  %v1340_v47 = vadd.f32 %v3627_v5, %v1339_v0  ;;  %v1815_v39 = vadd.f32 %v3644_v46, %v1814_v29  ;;  %v1864_v0 = vrot.slane %v2239_v60, 2  ;;  %v1538_v6 = vpop.f32.mrf.mxu0 }
 0x261   : > { %v1919_v3 = vadd.f32 %v1903_v61, %v1759_v35  ;;  %v1429_v8 = vmul.f32 %v1385_v25, %v1340_v47  ;;  %v1904_v48 = vmul.f32 %v1860_v14, %v1815_v39  ;;  %v1637_v25 = vadd.f32 %v3632_v27, %v1636_v54  ;;  %v4049_v35 = vld [vmem:[#allocation17_spill] sm:$0xff]  ;;  %v2402_v47 = vld [vmem:[%s2627_s19 + $0x98] sm:$0xff] }
 0x262   : > { %v1705_v61 = vsel %vm732_vm2, %v4049_v35, %v1704_v1  ;;  %v1562_v37 = vmul.f32 %v2402_v47, %v1533_v19  ;;  %v1865_v28 = vsel %vm893_vm3, %v4051_v31, %v1864_v0 }
 0x263   : > { %1935 = vst.msk [vmem:[%s3673_s30 + $0x30] sm:$0xff] %vm289_vm0, %v1919_v3  ;;  %v1445_v16 = vadd.f32 %v1429_v8, %v4044_v9  ;;  %v1639_v57 = vpop.f32.mrf.mxu1  ;;  %v4050_v3 = vld [vmem:[#allocation12_spill] sm:$0xff]  ;;  %v1746_v54 = vmul.f32 %v1705_v61, %v1637_v25  ;;  %v4056_v25 = vld [vmem:[#allocation13_spill] sm:$0xff] }
 0x265   : > { %v1576_v38 = vadd.f32 %v1560_v41, %v1445_v16 }
 0x266   : > { %v1342_v51 = vpop.f32.mrf.mxu3  ;;  %v1817_v40 = vpop.f32.mrf.mxu2 }
 0x267   : > { %v1760_v59 = vadd.f32 %v1744_v62, %v1576_v38  ;;  %v1343_v22 = vadd.f32 %v3627_v5, %v1342_v51  ;;  %v1818_v42 = vadd.f32 %v3644_v46, %v1817_v40  ;;  %v1640_v51 = vadd.f32 %v3632_v27, %v1639_v57 }
 0x269   : > { %v1920_v52 = vadd.f32 %v1904_v48, %v1760_v59  ;;  %v1430_v2 = vmul.f32 %v1343_v22, %v3470_v36  ;;  %v1390_v36 = vsel %vm893_vm3, %v4045_v17, %v1389_v34  ;;  %v1905_v15 = vmul.f32 %v1818_v42, %v3517_v53  ;;  %v4052_v59 = vld [vmem:[#allocation9_spill] sm:$0xff]  ;;  %v2403_v22 = vld [vmem:[%s2627_s19 + $0xa8] sm:$0xff]  ;;  %v1541_v34 = vpop.f32.mrf.mxu0 }
 0x26a   : > { %v1536_v17 = vadd.f32 %v3618_v20, %v1535_v55  ;;  %v1394_v48 = vrot.slane %v4052_v59, 2  ;;  %v1539_v42 = vadd.f32 %v3618_v20, %v1538_v6 }
 0x26b   : > { %1936 = vst.msk [vmem:[%s3673_s30 + $0x38] sm:$0xff] %vm289_vm0, %v1920_v52  ;;  %v1446_v11 = vadd.f32 %v1430_v2, %v4047_v58  ;;  %v1642_v41 = vpop.f32.mrf.mxu1  ;;  %v2242_v52 = vld [vmem:[%s2627_s19 + $0xb8] sm:$0x3]  ;;  %v4053_v2 = vld [vmem:[#allocation10_spill] sm:$0xff] }
 0x26c   : > { %v1563_v63 = vmul.f32 %v2403_v22, %v1536_v17  ;;  %v1709_v57 = vrot.slane %v2242_v52, 1 }
 0x26d   : > { %v1577_v26 = vadd.f32 %v1561_v50, %v1446_v11  ;;  %v1747_v50 = vmul.f32 %v1640_v51, %v4054_v45 }
 0x26e   : > { %v1345_v30 = vpop.f32.mrf.mxu3  ;;  %v1820_v24 = vpop.f32.mrf.mxu2 }
 0x26f   : > { %v1761_v56 = vadd.f32 %v1745_v23, %v1577_v26  ;;  %v1346_v4 = vadd.f32 %v3627_v5, %v1345_v30  ;;  %v1821_v8 = vadd.f32 %v3644_v46, %v1820_v24  ;;  %v1869_v30 = vrot.slane %v2242_v52, 2 }
 0x271   : > { %v1921_v29 = vadd.f32 %v1905_v15, %v1761_v56  ;;  %v1431_v43 = vmul.f32 %v1390_v36, %v1346_v4  ;;  %v1906_v62 = vmul.f32 %v1865_v28, %v1821_v8  ;;  %v1643_v36 = vadd.f32 %v3632_v27, %v1642_v41  ;;  %v4055_v56 = vld [vmem:[#allocation24_spill] sm:$0xff]  ;;  %v2404_v4 = vld [vmem:[%s2627_s19 + $0xb0] sm:$0xff]  ;;  %v1544_v41 = vpop.f32.mrf.mxu0 }
 0x272   : > { %v1710_v15 = vsel %vm732_vm2, %v4055_v56, %v1709_v57  ;;  %v1564_v0 = vmul.f32 %v2404_v4, %v1539_v42  ;;  %v1870_v35 = vsel %vm893_vm3, %v3554_v49, %v1869_v30  ;;  %v4057_v28 = vld [vmem:[#allocation16_spill] sm:$0xff] }
 0x273   : > { %1937 = vst.msk [vmem:[%s3673_s30 + $0x40] sm:$0xff] %vm289_vm0, %v1921_v29  ;;  %v1447_v33 = vadd.f32 %v1431_v43, %v4050_v3  ;;  %v1645_v1 = vpop.f32.mrf.mxu1  ;;  %v1748_v61 = vmul.f32 %v1710_v15, %v1643_v36  ;;  %v1542_v3 = vadd.f32 %v3618_v20, %v1541_v34  ;;  %v1545_v34 = vadd.f32 %v3618_v20, %v1544_v41  ;;  %v2246_v36 = vld [vmem:[%s2627_s19 + $0xd8] sm:$0xff] }
 0x274   : > { %v1716_v15 = vrot.slane %v2246_v36, 1 }
 0x275   : > { %v1578_v9 = vadd.f32 %v1562_v37, %v1447_v33  ;;  %v1565_v51 = vmul.f32 %v4057_v28, %v1542_v3 }
 0x276   : > { %v1348_v16 = vpop.f32.mrf.mxu3  ;;  %v1823_v39 = vpop.f32.mrf.mxu2 }
 0x277   : > { %v1762_v14 = vadd.f32 %v1746_v54, %v1578_v9  ;;  %v1349_v38 = vadd.f32 %v3627_v5, %v1348_v16  ;;  %v1824_v55 = vadd.f32 %v3644_v46, %v1823_v39  ;;  %v1871_v54 = vrot.slane %v4057_v28, 2  ;;  %v4061_v28 = vld [vmem:[#allocation20_spill] sm:$0xff] }
 0x278   : > { %v3827_v9 = vrot.slane %v3568_v18, 2  ;;  %v1646_v16 = vadd.f32 %v3632_v27, %v1645_v1 }
 0x279   : > { %v1922_v40 = vadd.f32 %v1906_v62, %v1762_v14  ;;  %v1432_v21 = vmul.f32 %v1349_v38, %v3517_v53  ;;  %v1395_v53 = vsel %vm893_vm3, %v4051_v31, %v1394_v48  ;;  %v1907_v23 = vmul.f32 %v1824_v55, %v3576_v32  ;;  %v4058_v62 = vld [vmem:[#allocation15_spill] sm:$0xff] }
 0x27a   : > { %v1399_v38 = vrot.slane %v4058_v62, 2  ;;  %v1873_v22 = vsel %vm893_vm3, %v1871_v54, %v3827_v9 }
 0x27b   : > { %1938 = vst.msk [vmem:[%s3673_s30 + $0x48] sm:$0xff] %vm289_vm0, %v1922_v40  ;;  %v1448_v12 = vadd.f32 %v1432_v21, %v4053_v2  ;;  %v1648_v14 = vpop.f32.mrf.mxu1  ;;  %v2245_v40 = vld [vmem:[%s2627_s19 + $0xd0] sm:$0x3]  ;;  %v4059_v21 = vld [vmem:[#allocation14_spill] sm:$0xff] }
 0x27c   : > { %v1874_v57 = vrot.slane %v2245_v40, 2 }
 0x27d   : > { %v1579_v60 = vadd.f32 %v1563_v63, %v1448_v12  ;;  %v1749_v63 = vmul.f32 %v1646_v16, %v3589_v44  ;;  %v1400_v12 = vsel %vm893_vm3, %v3554_v49, %v1399_v38  ;;  %v1566_v49 = vmul.f32 %v3568_v18, %v1545_v34 }
 0x27e   : > { %v1351_v58 = vpop.f32.mrf.mxu3  ;;  %v1826_v11 = vpop.f32.mrf.mxu2  ;;  %v1875_v30 = vsel %vm893_vm3, %v3827_v9, %v1874_v57 }
 0x27f   : > { %v1763_v7 = vadd.f32 %v1747_v50, %v1579_v60  ;;  %v1352_v26 = vadd.f32 %v3627_v5, %v1351_v58  ;;  %v1827_v43 = vadd.f32 %v3644_v46, %v1826_v11  ;;  %v1649_v58 = vadd.f32 %v3632_v27, %v1648_v14  ;;  %v1547_v11 = vpop.f32.mrf.mxu0 }
 0x281   : > { %v1923_v24 = vadd.f32 %v1907_v23, %v1763_v7  ;;  %v1433_v19 = vmul.f32 %v1395_v53, %v1352_v26  ;;  %v1908_v8 = vmul.f32 %v1870_v35, %v1827_v43  ;;  %v4060_v7 = vld [vmem:[#allocation18_spill] sm:$0xff]  ;;  %v1876_v35 = vrot.slane %v2246_v36, 2 }
 0x283   : > { %1939 = vst.msk [vmem:[%s3673_s30 + $0x50] sm:$0xff] %vm289_vm0, %v1923_v24  ;;  %v1449_v29 = vadd.f32 %v1433_v19, %v4056_v25  ;;  %v1651_v1 = vpop.f32.mrf.mxu1  ;;  %v2247_v24 = vld [vmem:[%s2627_s19 + $0xe0] sm:$0xff] }
 0x285   : > { %v1580_v47 = vadd.f32 %v1564_v0, %v1449_v29  ;;  %v1548_v0 = vadd.f32 %v3618_v20, %v1547_v11 }
 0x286   : > { %v1354_v37 = vpop.f32.mrf.mxu3  ;;  %v1829_v6 = vpop.f32.mrf.mxu2 }
 0x287   : > { %v1764_v33 = vadd.f32 %v1748_v61, %v1580_v47  ;;  %v1355_v31 = vadd.f32 %v3627_v5, %v1354_v37  ;;  %v1830_v48 = vadd.f32 %v3644_v46, %v1829_v6  ;;  %v1877_v61 = vrot.slane %v2247_v24, 2  ;;  %v1550_v16 = vpop.f32.mrf.mxu0 }
 0x288   : > { %v1652_v47 = vadd.f32 %v3632_v27, %v1651_v1 }
 0x289   : > { %v1924_v39 = vadd.f32 %v1908_v8, %v1764_v33  ;;  %v1434_v17 = vmul.f32 %v1355_v31, %v3576_v32  ;;  %v1714_v32 = vrot.slane %v2245_v40, 1  ;;  %v1909_v50 = vmul.f32 %v1873_v22, %v1830_v48  ;;  %v2248_v31 = vld [vmem:[%s2627_s19 + $0xe8] sm:$0x3] }
 0x28a   : > { %v1404_v33 = vrot.slane %v3601_v13, 2  ;;  %v1567_v8 = vmul.f32 %v2246_v36, %v1548_v0  ;;  %v1719_v38 = vrot.slane %v2248_v31, 1  ;;  %v1551_v40 = vadd.f32 %v3618_v20, %v1550_v16 }
 0x28b   : > { %1940 = vst.msk [vmem:[%s3673_s30 + $0x58] sm:$0xff] %vm289_vm0, %v1924_v39  ;;  %v1450_v59 = vadd.f32 %v1434_v17, %v4059_v21  ;;  %v1715_v42 = vsel %vm732_vm2, %v3572_v10, %v1714_v32  ;;  %v1717_v10 = vrot.slane %v2247_v24, 1  ;;  %v1878_v39 = vsel %vm893_vm3, %v1876_v35, %v1877_v61  ;;  %v1654_v62 = vpop.f32.mrf.mxu1 }
 0x28c   : > { %v1750_v19 = vmul.f32 %v1715_v42, %v1649_v58  ;;  %v1405_v13 = vsel %vm893_vm3, %v3827_v9, %v1404_v33  ;;  %v1568_v20 = vmul.f32 %v2247_v24, %v1551_v40 }
 0x28d   : > { %v1581_v52 = vadd.f32 %v1565_v51, %v1450_v59  ;;  %v1718_v3 = vsel %vm732_vm2, %v1716_v15, %v1717_v10 }
 0x28e   : > { %v1357_v2 = vpop.f32.mrf.mxu3  ;;  %v1832_v55 = vpop.f32.mrf.mxu2  ;;  %v1751_v17 = vmul.f32 %v1718_v3, %v1652_v47 }
 0x28f   : > { %v1765_v45 = vadd.f32 %v1749_v63, %v1581_v52  ;;  %v1358_v60 = vadd.f32 %v3627_v5, %v1357_v2  ;;  %v1833_v26 = vadd.f32 %v3644_v46, %v1832_v55  ;;  %v1879_v63 = vrot.slane %v2248_v31, 2 }
 0x290   : > { %v1655_v52 = vadd.f32 %v3632_v27, %v1654_v62 }
 0x291   : > { %v1925_v44 = vadd.f32 %v1909_v50, %v1765_v45  ;;  %v1435_v53 = vmul.f32 %v1400_v12, %v1358_v60  ;;  %v1910_v29 = vmul.f32 %v1875_v30, %v1833_v26  ;;  %v1720_v12 = vsel %vm732_vm2, %v1717_v10, %v1719_v38 }
 0x292   : > { %v1880_v34 = vsel %vm893_vm3, %v1877_v61, %v1879_v63  ;;  %v1752_v27 = vmul.f32 %v1720_v12, %v1655_v52 }
 0x293   : > { %1941 = vst.msk [vmem:[%s3673_s30 + $0x60] sm:$0xff] %vm289_vm0, %v1925_v44  ;;  %v1451_v23 = vadd.f32 %v1435_v53, %v4060_v7 }
 0x295   : > { %v1582_v56 = vadd.f32 %v1566_v49, %v1451_v23 }
 0x296   : > { %v1360_v4 = vpop.f32.mrf.mxu3  ;;  %v1835_v18 = vpop.f32.mrf.mxu2 }
 0x297   : > { %v1766_v25 = vadd.f32 %v1750_v19, %v1582_v56  ;;  %v1361_v43 = vadd.f32 %v3627_v5, %v1360_v4  ;;  %v1836_v41 = vadd.f32 %v3644_v46, %v1835_v18 }
 0x299   : > { %v1926_v37 = vadd.f32 %v1910_v29, %v1766_v25  ;;  %v1436_v6 = vmul.f32 %v1873_v22, %v1361_v43  ;;  %v1911_v59 = vmul.f32 %v1878_v39, %v1836_v41 }
 0x29b   : > { %1942 = vst.msk [vmem:[%s3673_s30 + $0x68] sm:$0xff] %vm289_vm0, %v1926_v37  ;;  %v1452_v54 = vadd.f32 %v1436_v6, %v4061_v28 }
 0x29d   : > { %v1583_v14 = vadd.f32 %v1567_v8, %v1452_v54 }
 0x29e   : > { %v1363_v51 = vpop.f32.mrf.mxu3  ;;  %v1838_v22 = vpop.f32.mrf.mxu2 }
 0x29f   : > { %v1767_v21 = vadd.f32 %v1751_v17, %v1583_v14  ;;  %v1364_v48 = vadd.f32 %v3627_v5, %v1363_v51  ;;  %v4062_v5 = vld [vmem:[#allocation22_spill] sm:$0xff]  ;;  %v1839_v55 = vadd.f32 %v3644_v46, %v1838_v22 }
 0x2a1   : > { %v1927_v32 = vadd.f32 %v1911_v59, %v1767_v21  ;;  %v1437_v2 = vmul.f32 %v1405_v13, %v1364_v48  ;;  %v1912_v60 = vmul.f32 %v1880_v34, %v1839_v55 }
 0x2a3   : > { %1943 = vst.msk [vmem:[%s3673_s30 + $0x70] sm:$0xff] %vm289_vm0, %v1927_v32  ;;  %v1453_v9 = vadd.f32 %v1437_v2, %v4062_v5 }
 0x2a5   : > { %v1584_v45 = vadd.f32 %v1568_v20, %v1453_v9 }
 0x2a7   : > { %v1768_v50 = vadd.f32 %v1752_v27, %v1584_v45 }
 0x2a9   : > { %v1928_v57 = vadd.f32 %v1912_v60, %v1768_v50 }
 0x2ab   : > { %1944 = vst.msk [vmem:[%s3673_s30 + $0x78] sm:$0xff] %vm289_vm0, %v1928_v57 }
 0x2ac   : > { %2432 = shalt.err (!%p2429_p6)
}
 0x2ad   : > { %s2501_s20 = smov 128   ;;  %s2502_s30 = smov 8  }
 0x2ae   : > { %2314 = dma.vmem_to_hbm [thread:$0]  (%p2589_p3), %s1962_s16, 2048, %s1964_s17, %s1946_s18, %s2501_s20, %s2501_s20, %s2502_s30  }
 0x2af PF: > { %p2320_p7 = scmp.ge.s32.totalorder %s2499_s28, 2  ;;  %s1978_s14 = sand.u32 1, %s2471_s21  }
 0x2b0   : > { %s1979_s12 = scalar_lea.sflag [#allocation3], %s1978_s14 }
 0x2b1   : > { %p2317_p9 = pnand %p2320_p7, %p2598_p8 }
 0x2b3   : > { %p2318_p10 = pneg %p2317_p9 }
 0x2b5   : > { %2466 = dma.done.wait (%p2318_p10), %s1979_s12, 2048  }
 0x2b6   : > { %2468 = vsyncadd (%p2318_p10), %s1979_s12, 4294965248  ;;  %s19_s28 = sadd.s32 1, %s2499_s28   ;;  %s4063_s21 = smov %s2475_s22 }
 0x2b7   : > { %p16_p11 = scmp.ge.s32.totalorder %s19_s28, 6   ;;  %s4064_s22 = smov %s2479_s23 }
 0x2b8   : > { %s4065_s23 = smov %s2607_s15  ;;  %s4066_s24 = smov %s2491_s26 }
 0x2b9   : > { %s4067_s25 = smov %s2495_s27  ;;  %s4068_s26 = smov %s4071_s7 }
 0x2ba   : > { %s4069_s27 = smov %s4075_s8  ;;  %18 = sbr.rel (!%p16_p11) target bundleno = 5 (0x5), region = 98 }
 0x2bf   :  { %1985 = vsyncpa [#allocation3], 1 }
 0x2c0   :  { %1987 = vsyncpa [#allocation3 + $0x1], 1 }

</bundles_post_ra>
